<compile_context>
chip_gen: v6e
topology: v6e:2x2x1
jax: 0.10.0
libtpu: 0.0.40
codegen_flags: <defaults>
</compile_context>

<pallas_src>
import functools

import jax
import jax.numpy as jnp
from jax.experimental import pallas as pl
from jax.experimental.pallas import tpu as pltpu


def _round_up(n, m):
    return ((n + m - 1) // m) * m


def _cdiv(a, b):
    return -(-a // b)


# --------------------------------------------------------------------------- #
# Kernel
# --------------------------------------------------------------------------- #
def _gru_kernel(x_ref, h0_ref, wih_ref, whh_ref, bgi_ref, bhn_ref,
                y_ref, hn_ref, gi_ref, *, seq_len, chunk):
    """One (batch-block, time-chunk) grid step of a batch of GRUs.

    x_ref  : (chunk, BB, Dp) f32   time-major input chunk
    h0_ref : (BB, Dp)        f32   initial hidden state for this batch block
    wih_ref: (Dp, 3*Dp)      bf16  packed input->hidden weights  (gates r|z|n)
    whh_ref: (Dp, 3*Dp)      bf16  packed hidden->hidden weights (gates r|z|n)
    bgi_ref: (1, 3*Dp)       f32   b_ih (all gates) + b_hh (r,z) folded together
    bhn_ref: (1, Dp)         f32   b_hh_n (must stay inside the r-gated term)
    y_ref  : (chunk, BB, Dp) f32   time-major output chunk
    hn_ref : (BB, Dp)        f32   final hidden state; also the cross-chunk carry
    gi_ref : (chunk, BB, 3*Dp) f32 VMEM scratch holding the hoisted input projection
    """
    t_blk = pl.program_id(1)

    # Initialize the resident carry (hn output block) from h0 on the first time chunk.
    @pl.when(t_blk == 0)
    def _init():
        hn_ref[...] = h0_ref[...]

    TT, BB, Dp = x_ref.shape
    G = wih_ref.shape[1]                      # 3 * Dp
    cdt = wih_ref.dtype                       # MXU compute dtype (bf16)

    # ---- Hoisted input projection: ONE big MXU matmul for the whole chunk ----
    x2d = x_ref[...].reshape(TT * BB, Dp).astype(cdt)
    gi = jnp.dot(x2d, wih_ref[...], preferred_element_type=jnp.float32)
    gi_ref[...] = (gi + bgi_ref[...]).reshape(TT, BB, G)

    # Loop-invariant operands hoisted out of the recurrence.
    whh = whh_ref[...]
    bhn = jnp.broadcast_to(bhn_ref[...], (BB, Dp))

    def step(t, h):
        gi_t = gi_ref[t]                                              # (BB, 3*Dp)
        gh = jnp.dot(h.astype(cdt), whh,
                     preferred_element_type=jnp.float32)              # (BB, 3*Dp)
        r = jax.nn.sigmoid(gi_t[:, :Dp] + gh[:, :Dp])
        z = jax.nn.sigmoid(gi_t[:, Dp:2 * Dp] + gh[:, Dp:2 * Dp])
        # PyTorch GRU: b_hn sits INSIDE the r-gated recurrent term.
        n = jnp.tanh(gi_t[:, 2 * Dp:] + r * (gh[:, 2 * Dp:] + bhn))
        h_new = n + z * (h - n)                                       # (1-z)*n + z*h
        if seq_len % chunk != 0:
            # Padded timesteps (beyond the true sequence) must not advance h.
            h_new = jnp.where(t_blk * chunk + t < seq_len, h_new, h)
        y_ref[t] = h_new
        return h_new

    h_final = jax.lax.fori_loop(0, TT, step, hn_ref[...],
                                unroll=min(TT, 8))
    hn_ref[...] = h_final


# --------------------------------------------------------------------------- #
# Wrapper: padding, time-major layout, grid/BlockSpec plumbing
# --------------------------------------------------------------------------- #
@jax.jit
def gru_forward(x, h0, wih_p, whh_p, b_gi, b_hn):
    """x: (B, T, D) f32, h0: (B, D) f32; packed/padded params from CentralizedStack."""
    B, T, D = x.shape
    Dp = wih_p.shape[0]
    G = wih_p.shape[1]

    # Batch padding (sublane multiple); split into 2 blocks when wide enough so the
    # 'parallel' grid axis can shard across v7x's two TensorCores.
    Bp = _round_up(B, 8)
    nb = 2 if (Bp >= 16 and (Bp // 2) % 8 == 0) else 1
    b_blk = Bp // nb

    # Time chunking: stream x/y through VMEM in chunks (auto double-buffered pipeline).
    chunk = min(T, 256)
    nt = _cdiv(T, chunk)
    T_pad = nt * chunk

    x_tm = jnp.transpose(x, (1, 0, 2))                                # (T, B, D)
    x_tm = jnp.pad(x_tm, ((0, T_pad - T), (0, Bp - B), (0, Dp - D)))
    h0_p = jnp.pad(h0, ((0, Bp - B), (0, Dp - D)))

    kernel = functools.partial(_gru_kernel, seq_len=T, chunk=chunk)

    y_pad, hn_pad = pl.pallas_call(
        kernel,
        out_shape=(
            jax.ShapeDtypeStruct((T_pad, Bp, Dp), jnp.float32),
            jax.ShapeDtypeStruct((Bp, Dp), jnp.float32),
        ),
        grid_spec=pltpu.PrefetchScalarGridSpec(
            num_scalar_prefetch=0,
            grid=(nb, nt),
            in_specs=[
                pl.BlockSpec((chunk, b_blk, Dp), lambda b, t: (t, b, 0)),  # x (time-major)
                pl.BlockSpec((b_blk, Dp),        lambda b, t: (b, 0)),     # h0
                pl.BlockSpec((Dp, G),            lambda b, t: (0, 0)),     # W_ih packed
                pl.BlockSpec((Dp, G),            lambda b, t: (0, 0)),     # W_hh packed
                pl.BlockSpec((1, G),             lambda b, t: (0, 0)),     # folded gi bias
                pl.BlockSpec((1, Dp),            lambda b, t: (0, 0)),     # b_hh_n
            ],
            out_specs=(
                pl.BlockSpec((chunk, b_blk, Dp), lambda b, t: (t, b, 0)),  # y
                pl.BlockSpec((b_blk, Dp),        lambda b, t: (b, 0)),     # hn (carry)
            ),
            scratch_shapes=[pltpu.VMEM((chunk, b_blk, G), jnp.float32)],   # hoisted gi
        ),
        compiler_params=pltpu.CompilerParams(
            dimension_semantics=("parallel", "arbitrary")),
    )(x_tm, h0_p, wih_p, whh_p, b_gi, b_hn)

    y = jnp.transpose(y_pad[:T, :B, :D], (1, 0, 2))                   # back to (B, T, D)
    hn = hn_pad[:B, :D]
    return y, hn


# --------------------------------------------------------------------------- #
# Module
# --------------------------------------------------------------------------- #
class CentralizedStack:
    """JAX/Pallas port of melnet.model.initial.CentralizedStack."""

    def __init__(self, width, key, compute_dtype=jnp.bfloat16):
        self.width = width
        bound = 1.0 / (width ** 0.5)
        k0, k1, k2, k3 = jax.random.split(key, 4)
        # torch param shapes: weight_ih_l0 (3D, D), weight_hh_l0 (3D, D),
        # bias_ih_l0 (3D,), bias_hh_l0 (3D,); gate order (r, z, n).
        w_ih = jax.random.uniform(k0, (3 * width, width), jnp.float32, -bound, bound)
        w_hh = jax.random.uniform(k1, (3 * width, width), jnp.float32, -bound, bound)
        b_ih = jax.random.uniform(k2, (3 * width,), jnp.float32, -bound, bound)
        b_hh = jax.random.uniform(k3, (3 * width,), jnp.float32, -bound, bound)

        D = width
        Dp = _round_up(D, 128)   # lane-dense / MXU-friendly padding
        self.Dp = Dp

        def pack_weight(w):
            w3 = jnp.transpose(w.reshape(3, D, D), (0, 2, 1))          # (gate, in, out)
            w3 = jnp.pad(w3, ((0, 0), (0, Dp - D), (0, Dp - D)))
            return jnp.concatenate([w3[0], w3[1], w3[2]], axis=1)      # (Dp, 3*Dp)

        # Packed, padded, bf16 MXU weights (gate math stays f32 inside the kernel).
        self.w_ih_packed = pack_weight(w_ih).astype(compute_dtype)
        self.w_hh_packed = pack_weight(w_hh).astype(compute_dtype)

        bi = b_ih.reshape(3, D)
        bh = b_hh.reshape(3, D)
        # Fold b_ih (all gates) + b_hh (r, z) into the hoisted input projection;
        # b_hh_n must stay inside the r-gated recurrent term (PyTorch semantics).
        b_gi = jnp.stack([bi[0] + bh[0], bi[1] + bh[1], bi[2]], axis=0)     # (3, D)
        self.b_gi = jnp.pad(b_gi, ((0, 0), (0, Dp - D))).reshape(1, 3 * Dp)
        self.b_hn = jnp.pad(bh[2], (0, Dp - D)).reshape(1, Dp)

        # Unpacked f32 copies for the pure-JAX reference.
        self.w_ih_ref = jnp.transpose(w_ih.reshape(3, D, D), (0, 2, 1))
        self.w_hh_ref = jnp.transpose(w_hh.reshape(3, D, D), (0, 2, 1))
        self.b_ih_ref = bi.reshape(3, 1, D)
        self.b_hh_ref = bh.reshape(3, 1, D)

        self.hidden_states = dict()

    def forward(self, x, entries, flag_lasts):
        B, T, D = x.shape
        zeros = jnp.zeros((D,), jnp.float32)
        # Host-side per-entry hidden-state bookkeeping, same as the PyTorch module.
        h0 = jnp.stack(
            [self.hidden_states.setdefault(entries[i], zeros) for i in range(B)],
            axis=0,
        )
        y, hn = gru_forward(x, h0, self.w_ih_packed, self.w_hh_packed,
                            self.b_gi, self.b_hn)
        for i in range(B):
            if flag_lasts[i]:
                del self.hidden_states[entries[i]]
            else:
                self.hidden_states[entries[i]] = hn[i]
        return y


# --------------------------------------------------------------------------- #
# Pure-JAX reference (f32, PyTorch GRU semantics)
# --------------------------------------------------------------------------- #
def gru_reference(x, h0, w_ih, w_hh, b_ih, b_hh):
    def step(h, x_t):
        gi_r = x_t @ w_ih[0] + b_ih[0]
        gi_z = x_t @ w_ih[1] + b_ih[1]
        gi_n = x_t @ w_ih[2] + b_ih[2]
        gh_r = h @ w_hh[0] + b_hh[0]
        gh_z = h @ w_hh[1] + b_hh[1]
        gh_n = h @ w_hh[2] + b_hh[2]
        r = jax.nn.sigmoid(gi_r + gh_r)
        z = jax.nn.sigmoid(gi_z + gh_z)
        n = jnp.tanh(gi_n + r * gh_n)
        h_new = (1.0 - z) * n + z * h
        return h_new, h_new

    hn, ys = jax.lax.scan(step, h0, jnp.swapaxes(x, 0, 1))
    return jnp.swapaxes(ys, 0, 1), hn


if __name__ == "__main__":
    B, T, D = 2, 8, 32
    key = jax.random.PRNGKey(0)
    k_param, k_x1, k_x2 = jax.random.split(key, 3)

    stack = CentralizedStack(D, k_param)

    # --- call 1: both entries fresh; "seq_b" ends after this call -------------
    x1 = jax.random.normal(k_x1, (B, T, D), jnp.float32)
    y1 = stack.forward(x1, entries=("seq_a", "seq_b"), flag_lasts=(False, True))
    y1 = jax.block_until_ready(y1)

    h0_ref = jnp.zeros((B, D), jnp.float32)
    y1_ref, hn1_ref = gru_reference(x1, h0_ref, stack.w_ih_ref, stack.w_hh_ref,
                                    stack.b_ih_ref, stack.b_hh_ref)
    # bf16 MXU inputs with f32 accumulation/gates vs an all-f32 reference.
    assert jnp.allclose(y1, y1_ref, atol=2e-2, rtol=2e-2), \
        float(jnp.max(jnp.abs(y1 - y1_ref)))
    assert "seq_b" not in stack.hidden_states and "seq_a" in stack.hidden_states

    # --- call 2: "seq_a" resumes from its stored hidden state, "seq_c" is new -
    x2 = jax.random.normal(k_x2, (B, T, D), jnp.float32)
    y2 = stack.forward(x2, entries=("seq_a", "seq_c"), flag_lasts=(True, False))
    y2 = jax.block_until_ready(y2)

    h0_2_ref = jnp.stack([hn1_ref[0], jnp.zeros((D,), jnp.float32)], axis=0)
    y2_ref, _ = gru_reference(x2, h0_2_ref, stack.w_ih_ref, stack.w_hh_ref,
                              stack.b_ih_ref, stack.b_hh_ref)
    assert jnp.allclose(y2, y2_ref, atol=2e-2, rtol=2e-2), \
        float(jnp.max(jnp.abs(y2 - y2_ref)))
    assert "seq_a" not in stack.hidden_states and "seq_c" in stack.hidden_states

    print("KERNEL_OK")
</pallas_src>

<mosaic_0001>
module attributes {stable_mosaic.version = 11 : i64} {
  func.func @_gru_kernel(%arg0: i32, %arg1: i32, %arg2: memref<8x8x128xf32, #tpu.memory_space<vmem>>, %arg3: memref<8x128xf32, #tpu.memory_space<vmem>>, %arg4: memref<128x384xbf16, #tpu.memory_space<vmem>>, %arg5: memref<128x384xbf16, #tpu.memory_space<vmem>>, %arg6: memref<1x384xf32, #tpu.memory_space<vmem>>, %arg7: memref<1x128xf32, #tpu.memory_space<vmem>>, %arg8: memref<8x8x128xf32, #tpu.memory_space<vmem>>, %arg9: memref<8x128xf32, #tpu.memory_space<vmem>>, %arg10: memref<8x8x384xf32, #tpu.memory_space<vmem>>) attributes {dimension_semantics = [#tpu.dimension_semantics<parallel>, #tpu.dimension_semantics<arbitrary>], iteration_bounds = array<i64: 1, 1>, scalar_prefetch = 0 : i64, scratch_operands = 1 : i64, tpu.core_type = #tpu.core_type<tc>, window_params = [{transform_indices = @transform_0, window_bounds = array<i64: 8, 8, 128>}, {transform_indices = @transform_1, window_bounds = array<i64: 8, 128>}, {pipeline_mode = #tpu.pipeline_mode<synchronous>, transform_indices = @transform_2, window_bounds = array<i64: 128, 384>}, {pipeline_mode = #tpu.pipeline_mode<synchronous>, transform_indices = @transform_3, window_bounds = array<i64: 128, 384>}, {pipeline_mode = #tpu.pipeline_mode<synchronous>, transform_indices = @transform_4, window_bounds = array<i64: 1, 384>}, {pipeline_mode = #tpu.pipeline_mode<synchronous>, transform_indices = @transform_5, window_bounds = array<i64: 1, 128>}, {transform_indices = @transform_6, window_bounds = array<i64: 8, 8, 128>}, {transform_indices = @transform_7, window_bounds = array<i64: 8, 128>}]} {
    %c0_i32 = arith.constant 0 : i32
    %0 = arith.cmpi eq, %arg1, %c0_i32 : i32
    %1 = arith.extui %0 : i1 to i32
    %c0_i32_0 = arith.constant 0 : i32
    %2 = arith.cmpi ne, %1, %c0_i32_0 : i32
    scf.if %2 {
      %c0_75 = arith.constant 0 : index
      %c0_76 = arith.constant 0 : index
      %291 = vector.load %arg3[%c0_75, %c0_76] : memref<8x128xf32, #tpu.memory_space<vmem>>, vector<8x128xf32>
      %c0_77 = arith.constant 0 : index
      %c0_78 = arith.constant 0 : index
      %292 = vector.load %arg9[%c0_77, %c0_78] : memref<8x128xf32, #tpu.memory_space<vmem>>, vector<8x128xf32>
      tpu.vector_store %arg9[%c0_77, %c0_78], %291 {strides = array<i32>} : memref<8x128xf32, #tpu.memory_space<vmem>>, vector<8x128xf32>,
    } else {
    }
    %c0 = arith.constant 0 : index
    %c0_1 = arith.constant 0 : index
    %c0_2 = arith.constant 0 : index
    %3 = vector.load %arg2[%c0, %c0_1, %c0_2] : memref<8x8x128xf32, #tpu.memory_space<vmem>>, vector<8x8x128xf32>
    %4 = vector.shape_cast %3 : vector<8x8x128xf32> to vector<64x128xf32>
    %5 = arith.truncf %4 : vector<64x128xf32> to vector<64x128xbf16>
    %c0_3 = arith.constant 0 : index
    %c0_4 = arith.constant 0 : index
    %6 = vector.load %arg4[%c0_3, %c0_4] : memref<128x384xbf16, #tpu.memory_space<vmem>>, vector<128x384xbf16>
    %cst = arith.constant dense<0.000000e+00> : vector<64x384xf32>
    %7 = tpu.matmul %5, %6, %cst {dimension_numbers = #tpu.dot_dimension_numbers<[1], [0], [0], [1], [0, 0, 1, 1], [], []>} : vector<64x128xbf16>, vector<128x384xbf16>, vector<64x384xf32> -> vector<64x384xf32>
    %c0_5 = arith.constant 0 : index
    %c0_6 = arith.constant 0 : index
    %8 = vector.load %arg6[%c0_5, %c0_6] : memref<1x384xf32, #tpu.memory_space<vmem>>, vector<1x384xf32>
    %9 = vector.broadcast %8 : vector<1x384xf32> to vector<64x384xf32>
    %10 = arith.addf %7, %9 : vector<64x384xf32>
    %11 = vector.shape_cast %10 : vector<64x384xf32> to vector<8x8x384xf32>
    %c0_7 = arith.constant 0 : index
    %c0_8 = arith.constant 0 : index
    %c0_9 = arith.constant 0 : index
    %12 = vector.load %arg10[%c0_7, %c0_8, %c0_9] : memref<8x8x384xf32, #tpu.memory_space<vmem>>, vector<8x8x384xf32>
    tpu.vector_store %arg10[%c0_7, %c0_8, %c0_9], %11 {strides = array<i32>} : memref<8x8x384xf32, #tpu.memory_space<vmem>>, vector<8x8x384xf32>,
    %c0_10 = arith.constant 0 : index
    %c0_11 = arith.constant 0 : index
    %13 = vector.load %arg5[%c0_10, %c0_11] : memref<128x384xbf16, #tpu.memory_space<vmem>>, vector<128x384xbf16>
    %c0_12 = arith.constant 0 : index
    %c0_13 = arith.constant 0 : index
    %14 = vector.load %arg7[%c0_12, %c0_13] : memref<1x128xf32, #tpu.memory_space<vmem>>, vector<1x128xf32>
    %15 = vector.shape_cast %14 : vector<1x128xf32> to vector<1x128xf32>
    %16 = vector.broadcast %15 : vector<1x128xf32> to vector<8x128xf32>
    %c0_14 = arith.constant 0 : index
    %c0_15 = arith.constant 0 : index
    %17 = vector.load %arg9[%c0_14, %c0_15] : memref<8x128xf32, #tpu.memory_space<vmem>>, vector<8x128xf32>
    %c0_i32_16 = arith.constant 0 : i32
    %18 = arith.index_cast %c0_i32_16 : i32 to index
    %c0_17 = arith.constant 0 : index
    %c0_18 = arith.constant 0 : index
    %19 = vector.load %arg10[%18, %c0_17, %c0_18] : memref<8x8x384xf32, #tpu.memory_space<vmem>>, vector<1x8x384xf32>
    %20 = vector.shape_cast %19 : vector<1x8x384xf32> to vector<8x384xf32>
    %21 = arith.truncf %17 : vector<8x128xf32> to vector<8x128xbf16>
    %cst_19 = arith.constant dense<0.000000e+00> : vector<8x384xf32>
    %22 = tpu.matmul %21, %13, %cst_19 {dimension_numbers = #tpu.dot_dimension_numbers<[1], [0], [0], [1], [0, 0, 1, 1], [], []>} : vector<8x128xbf16>, vector<128x384xbf16>, vector<8x384xf32> -> vector<8x384xf32>
    %23 = vector.extract_strided_slice %20 {offsets = [0, 0], sizes = [8, 128], strides = [1, 1]} : vector<8x384xf32> to vector<8x128xf32>
    %24 = vector.extract_strided_slice %22 {offsets = [0, 0], sizes = [8, 128], strides = [1, 1]} : vector<8x384xf32> to vector<8x128xf32>
    %25 = arith.addf %23, %24 : vector<8x128xf32>
    %26 = arith.negf %25 : vector<8x128xf32>
    %27 = math.exp %26 : vector<8x128xf32>
    %cst_20 = arith.constant 1.000000e+00 : f32
    %28 = vector.broadcast %cst_20 : f32 to vector<8x128xf32>
    %29 = arith.addf %28, %27 : vector<8x128xf32>
    %30 = arith.divf %28, %29 : vector<8x128xf32>
    %31 = vector.extract_strided_slice %20 {offsets = [0, 128], sizes = [8, 128], strides = [1, 1]} : vector<8x384xf32> to vector<8x128xf32>
    %32 = vector.extract_strided_slice %22 {offsets = [0, 128], sizes = [8, 128], strides = [1, 1]} : vector<8x384xf32> to vector<8x128xf32>
    %33 = arith.addf %31, %32 : vector<8x128xf32>
    %34 = arith.negf %33 : vector<8x128xf32>
    %35 = math.exp %34 : vector<8x128xf32>
    %cst_21 = arith.constant 1.000000e+00 : f32
    %36 = vector.broadcast %cst_21 : f32 to vector<8x128xf32>
    %37 = arith.addf %36, %35 : vector<8x128xf32>
    %38 = arith.divf %36, %37 : vector<8x128xf32>
    %39 = vector.extract_strided_slice %20 {offsets = [0, 256], sizes = [8, 128], strides = [1, 1]} : vector<8x384xf32> to vector<8x128xf32>
    %40 = vector.extract_strided_slice %22 {offsets = [0, 256], sizes = [8, 128], strides = [1, 1]} : vector<8x384xf32> to vector<8x128xf32>
    %41 = arith.addf %40, %16 : vector<8x128xf32>
    %42 = arith.mulf %30, %41 : vector<8x128xf32>
    %43 = arith.addf %39, %42 : vector<8x128xf32>
    %44 = math.tanh %43 : vector<8x128xf32>
    %45 = arith.subf %17, %44 : vector<8x128xf32>
    %46 = arith.mulf %38, %45 : vector<8x128xf32>
    %47 = arith.addf %44, %46 : vector<8x128xf32>
    %48 = arith.index_cast %c0_i32_16 : i32 to index
    %c0_22 = arith.constant 0 : index
    %c0_23 = arith.constant 0 : index
    %49 = vector.load %arg8[%48, %c0_22, %c0_23] : memref<8x8x128xf32, #tpu.memory_space<vmem>>, vector<1x8x128xf32>
    %50 = vector.shape_cast %49 : vector<1x8x128xf32> to vector<8x128xf32>
    %51 = vector.shape_cast %47 : vector<8x128xf32> to vector<1x8x128xf32>
    tpu.vector_store %arg8[%48, %c0_22, %c0_23], %51 {strides = array<i32>} : memref<8x8x128xf32, #tpu.memory_space<vmem>>, vector<1x8x128xf32>,
    %c1_i32 = arith.constant 1 : i32
    %52 = arith.index_cast %c1_i32 : i32 to index
    %c0_24 = arith.constant 0 : index
    %c0_25 = arith.constant 0 : index
    %53 = vector.load %arg10[%52, %c0_24, %c0_25] : memref<8x8x384xf32, #tpu.memory_space<vmem>>, vector<1x8x384xf32>
    %54 = vector.shape_cast %53 : vector<1x8x384xf32> to vector<8x384xf32>
    %55 = arith.truncf %47 : vector<8x128xf32> to vector<8x128xbf16>
    %cst_26 = arith.constant dense<0.000000e+00> : vector<8x384xf32>
    %56 = tpu.matmul %55, %13, %cst_26 {dimension_numbers = #tpu.dot_dimension_numbers<[1], [0], [0], [1], [0, 0, 1, 1], [], []>} : vector<8x128xbf16>, vector<128x384xbf16>, vector<8x384xf32> -> vector<8x384xf32>
    %57 = vector.extract_strided_slice %54 {offsets = [0, 0], sizes = [8, 128], strides = [1, 1]} : vector<8x384xf32> to vector<8x128xf32>
    %58 = vector.extract_strided_slice %56 {offsets = [0, 0], sizes = [8, 128], strides = [1, 1]} : vector<8x384xf32> to vector<8x128xf32>
    %59 = arith.addf %57, %58 : vector<8x128xf32>
    %60 = arith.negf %59 : vector<8x128xf32>
    %61 = math.exp %60 : vector<8x128xf32>
    %cst_27 = arith.constant 1.000000e+00 : f32
    %62 = vector.broadcast %cst_27 : f32 to vector<8x128xf32>
    %63 = arith.addf %62, %61 : vector<8x128xf32>
    %64 = arith.divf %62, %63 : vector<8x128xf32>
    %65 = vector.extract_strided_slice %54 {offsets = [0, 128], sizes = [8, 128], strides = [1, 1]} : vector<8x384xf32> to vector<8x128xf32>
    %66 = vector.extract_strided_slice %56 {offsets = [0, 128], sizes = [8, 128], strides = [1, 1]} : vector<8x384xf32> to vector<8x128xf32>
    %67 = arith.addf %65, %66 : vector<8x128xf32>
    %68 = arith.negf %67 : vector<8x128xf32>
    %69 = math.exp %68 : vector<8x128xf32>
    %cst_28 = arith.constant 1.000000e+00 : f32
    %70 = vector.broadcast %cst_28 : f32 to vector<8x128xf32>
    %71 = arith.addf %70, %69 : vector<8x128xf32>
    %72 = arith.divf %70, %71 : vector<8x128xf32>
    %73 = vector.extract_strided_slice %54 {offsets = [0, 256], sizes = [8, 128], strides = [1, 1]} : vector<8x384xf32> to vector<8x128xf32>
    %74 = vector.extract_strided_slice %56 {offsets = [0, 256], sizes = [8, 128], strides = [1, 1]} : vector<8x384xf32> to vector<8x128xf32>
    %75 = arith.addf %74, %16 : vector<8x128xf32>
    %76 = arith.mulf %64, %75 : vector<8x128xf32>
    %77 = arith.addf %73, %76 : vector<8x128xf32>
    %78 = math.tanh %77 : vector<8x128xf32>
    %79 = arith.subf %47, %78 : vector<8x128xf32>
    %80 = arith.mulf %72, %79 : vector<8x128xf32>
    %81 = arith.addf %78, %80 : vector<8x128xf32>
    %82 = arith.index_cast %c1_i32 : i32 to index
    %c0_29 = arith.constant 0 : index
    %c0_30 = arith.constant 0 : index
    %83 = vector.load %arg8[%82, %c0_29, %c0_30] : memref<8x8x128xf32, #tpu.memory_space<vmem>>, vector<1x8x128xf32>
    %84 = vector.shape_cast %83 : vector<1x8x128xf32> to vector<8x128xf32>
    %85 = vector.shape_cast %81 : vector<8x128xf32> to vector<1x8x128xf32>
    tpu.vector_store %arg8[%82, %c0_29, %c0_30], %85 {strides = array<i32>} : memref<8x8x128xf32, #tpu.memory_space<vmem>>, vector<1x8x128xf32>,
    %c2_i32 = arith.constant 2 : i32
    %86 = arith.index_cast %c2_i32 : i32 to index
    %c0_31 = arith.constant 0 : index
    %c0_32 = arith.constant 0 : index
    %87 = vector.load %arg10[%86, %c0_31, %c0_32] : memref<8x8x384xf32, #tpu.memory_space<vmem>>, vector<1x8x384xf32>
    %88 = vector.shape_cast %87 : vector<1x8x384xf32> to vector<8x384xf32>
    %89 = arith.truncf %81 : vector<8x128xf32> to vector<8x128xbf16>
    %cst_33 = arith.constant dense<0.000000e+00> : vector<8x384xf32>
    %90 = tpu.matmul %89, %13, %cst_33 {dimension_numbers = #tpu.dot_dimension_numbers<[1], [0], [0], [1], [0, 0, 1, 1], [], []>} : vector<8x128xbf16>, vector<128x384xbf16>, vector<8x384xf32> -> vector<8x384xf32>
    %91 = vector.extract_strided_slice %88 {offsets = [0, 0], sizes = [8, 128], strides = [1, 1]} : vector<8x384xf32> to vector<8x128xf32>
    %92 = vector.extract_strided_slice %90 {offsets = [0, 0], sizes = [8, 128], strides = [1, 1]} : vector<8x384xf32> to vector<8x128xf32>
    %93 = arith.addf %91, %92 : vector<8x128xf32>
    %94 = arith.negf %93 : vector<8x128xf32>
    %95 = math.exp %94 : vector<8x128xf32>
    %cst_34 = arith.constant 1.000000e+00 : f32
    %96 = vector.broadcast %cst_34 : f32 to vector<8x128xf32>
    %97 = arith.addf %96, %95 : vector<8x128xf32>
    %98 = arith.divf %96, %97 : vector<8x128xf32>
    %99 = vector.extract_strided_slice %88 {offsets = [0, 128], sizes = [8, 128], strides = [1, 1]} : vector<8x384xf32> to vector<8x128xf32>
    %100 = vector.extract_strided_slice %90 {offsets = [0, 128], sizes = [8, 128], strides = [1, 1]} : vector<8x384xf32> to vector<8x128xf32>
    %101 = arith.addf %99, %100 : vector<8x128xf32>
    %102 = arith.negf %101 : vector<8x128xf32>
    %103 = math.exp %102 : vector<8x128xf32>
    %cst_35 = arith.constant 1.000000e+00 : f32
    %104 = vector.broadcast %cst_35 : f32 to vector<8x128xf32>
    %105 = arith.addf %104, %103 : vector<8x128xf32>
    %106 = arith.divf %104, %105 : vector<8x128xf32>
    %107 = vector.extract_strided_slice %88 {offsets = [0, 256], sizes = [8, 128], strides = [1, 1]} : vector<8x384xf32> to vector<8x128xf32>
    %108 = vector.extract_strided_slice %90 {offsets = [0, 256], sizes = [8, 128], strides = [1, 1]} : vector<8x384xf32> to vector<8x128xf32>
    %109 = arith.addf %108, %16 : vector<8x128xf32>
    %110 = arith.mulf %98, %109 : vector<8x128xf32>
    %111 = arith.addf %107, %110 : vector<8x128xf32>
    %112 = math.tanh %111 : vector<8x128xf32>
    %113 = arith.subf %81, %112 : vector<8x128xf32>
    %114 = arith.mulf %106, %113 : vector<8x128xf32>
    %115 = arith.addf %112, %114 : vector<8x128xf32>
    %116 = arith.index_cast %c2_i32 : i32 to index
    %c0_36 = arith.constant 0 : index
    %c0_37 = arith.constant 0 : index
    %117 = vector.load %arg8[%116, %c0_36, %c0_37] : memref<8x8x128xf32, #tpu.memory_space<vmem>>, vector<1x8x128xf32>
    %118 = vector.shape_cast %117 : vector<1x8x128xf32> to vector<8x128xf32>
    %119 = vector.shape_cast %115 : vector<8x128xf32> to vector<1x8x128xf32>
    tpu.vector_store %arg8[%116, %c0_36, %c0_37], %119 {strides = array<i32>} : memref<8x8x128xf32, #tpu.memory_space<vmem>>, vector<1x8x128xf32>,
    %c3_i32 = arith.constant 3 : i32
    %120 = arith.index_cast %c3_i32 : i32 to index
    %c0_38 = arith.constant 0 : index
    %c0_39 = arith.constant 0 : index
    %121 = vector.load %arg10[%120, %c0_38, %c0_39] : memref<8x8x384xf32, #tpu.memory_space<vmem>>, vector<1x8x384xf32>
    %122 = vector.shape_cast %121 : vector<1x8x384xf32> to vector<8x384xf32>
    %123 = arith.truncf %115 : vector<8x128xf32> to vector<8x128xbf16>
    %cst_40 = arith.constant dense<0.000000e+00> : vector<8x384xf32>
    %124 = tpu.matmul %123, %13, %cst_40 {dimension_numbers = #tpu.dot_dimension_numbers<[1], [0], [0], [1], [0, 0, 1, 1], [], []>} : vector<8x128xbf16>, vector<128x384xbf16>, vector<8x384xf32> -> vector<8x384xf32>
    %125 = vector.extract_strided_slice %122 {offsets = [0, 0], sizes = [8, 128], strides = [1, 1]} : vector<8x384xf32> to vector<8x128xf32>
    %126 = vector.extract_strided_slice %124 {offsets = [0, 0], sizes = [8, 128], strides = [1, 1]} : vector<8x384xf32> to vector<8x128xf32>
    %127 = arith.addf %125, %126 : vector<8x128xf32>
    %128 = arith.negf %127 : vector<8x128xf32>
    %129 = math.exp %128 : vector<8x128xf32>
    %cst_41 = arith.constant 1.000000e+00 : f32
    %130 = vector.broadcast %cst_41 : f32 to vector<8x128xf32>
    %131 = arith.addf %130, %129 : vector<8x128xf32>
    %132 = arith.divf %130, %131 : vector<8x128xf32>
    %133 = vector.extract_strided_slice %122 {offsets = [0, 128], sizes = [8, 128], strides = [1, 1]} : vector<8x384xf32> to vector<8x128xf32>
    %134 = vector.extract_strided_slice %124 {offsets = [0, 128], sizes = [8, 128], strides = [1, 1]} : vector<8x384xf32> to vector<8x128xf32>
    %135 = arith.addf %133, %134 : vector<8x128xf32>
    %136 = arith.negf %135 : vector<8x128xf32>
    %137 = math.exp %136 : vector<8x128xf32>
    %cst_42 = arith.constant 1.000000e+00 : f32
    %138 = vector.broadcast %cst_42 : f32 to vector<8x128xf32>
    %139 = arith.addf %138, %137 : vector<8x128xf32>
    %140 = arith.divf %138, %139 : vector<8x128xf32>
    %141 = vector.extract_strided_slice %122 {offsets = [0, 256], sizes = [8, 128], strides = [1, 1]} : vector<8x384xf32> to vector<8x128xf32>
    %142 = vector.extract_strided_slice %124 {offsets = [0, 256], sizes = [8, 128], strides = [1, 1]} : vector<8x384xf32> to vector<8x128xf32>
    %143 = arith.addf %142, %16 : vector<8x128xf32>
    %144 = arith.mulf %132, %143 : vector<8x128xf32>
    %145 = arith.addf %141, %144 : vector<8x128xf32>
    %146 = math.tanh %145 : vector<8x128xf32>
    %147 = arith.subf %115, %146 : vector<8x128xf32>
    %148 = arith.mulf %140, %147 : vector<8x128xf32>
    %149 = arith.addf %146, %148 : vector<8x128xf32>
    %150 = arith.index_cast %c3_i32 : i32 to index
    %c0_43 = arith.constant 0 : index
    %c0_44 = arith.constant 0 : index
    %151 = vector.load %arg8[%150, %c0_43, %c0_44] : memref<8x8x128xf32, #tpu.memory_space<vmem>>, vector<1x8x128xf32>
    %152 = vector.shape_cast %151 : vector<1x8x128xf32> to vector<8x128xf32>
    %153 = vector.shape_cast %149 : vector<8x128xf32> to vector<1x8x128xf32>
    tpu.vector_store %arg8[%150, %c0_43, %c0_44], %153 {strides = array<i32>} : memref<8x8x128xf32, #tpu.memory_space<vmem>>, vector<1x8x128xf32>,
    %c4_i32 = arith.constant 4 : i32
    %154 = arith.index_cast %c4_i32 : i32 to index
    %c0_45 = arith.constant 0 : index
    %c0_46 = arith.constant 0 : index
    %155 = vector.load %arg10[%154, %c0_45, %c0_46] : memref<8x8x384xf32, #tpu.memory_space<vmem>>, vector<1x8x384xf32>
    %156 = vector.shape_cast %155 : vector<1x8x384xf32> to vector<8x384xf32>
    %157 = arith.truncf %149 : vector<8x128xf32> to vector<8x128xbf16>
    %cst_47 = arith.constant dense<0.000000e+00> : vector<8x384xf32>
    %158 = tpu.matmul %157, %13, %cst_47 {dimension_numbers = #tpu.dot_dimension_numbers<[1], [0], [0], [1], [0, 0, 1, 1], [], []>} : vector<8x128xbf16>, vector<128x384xbf16>, vector<8x384xf32> -> vector<8x384xf32>
    %159 = vector.extract_strided_slice %156 {offsets = [0, 0], sizes = [8, 128], strides = [1, 1]} : vector<8x384xf32> to vector<8x128xf32>
    %160 = vector.extract_strided_slice %158 {offsets = [0, 0], sizes = [8, 128], strides = [1, 1]} : vector<8x384xf32> to vector<8x128xf32>
    %161 = arith.addf %159, %160 : vector<8x128xf32>
    %162 = arith.negf %161 : vector<8x128xf32>
    %163 = math.exp %162 : vector<8x128xf32>
    %cst_48 = arith.constant 1.000000e+00 : f32
    %164 = vector.broadcast %cst_48 : f32 to vector<8x128xf32>
    %165 = arith.addf %164, %163 : vector<8x128xf32>
    %166 = arith.divf %164, %165 : vector<8x128xf32>
    %167 = vector.extract_strided_slice %156 {offsets = [0, 128], sizes = [8, 128], strides = [1, 1]} : vector<8x384xf32> to vector<8x128xf32>
    %168 = vector.extract_strided_slice %158 {offsets = [0, 128], sizes = [8, 128], strides = [1, 1]} : vector<8x384xf32> to vector<8x128xf32>
    %169 = arith.addf %167, %168 : vector<8x128xf32>
    %170 = arith.negf %169 : vector<8x128xf32>
    %171 = math.exp %170 : vector<8x128xf32>
    %cst_49 = arith.constant 1.000000e+00 : f32
    %172 = vector.broadcast %cst_49 : f32 to vector<8x128xf32>
    %173 = arith.addf %172, %171 : vector<8x128xf32>
    %174 = arith.divf %172, %173 : vector<8x128xf32>
    %175 = vector.extract_strided_slice %156 {offsets = [0, 256], sizes = [8, 128], strides = [1, 1]} : vector<8x384xf32> to vector<8x128xf32>
    %176 = vector.extract_strided_slice %158 {offsets = [0, 256], sizes = [8, 128], strides = [1, 1]} : vector<8x384xf32> to vector<8x128xf32>
    %177 = arith.addf %176, %16 : vector<8x128xf32>
    %178 = arith.mulf %166, %177 : vector<8x128xf32>
    %179 = arith.addf %175, %178 : vector<8x128xf32>
    %180 = math.tanh %179 : vector<8x128xf32>
    %181 = arith.subf %149, %180 : vector<8x128xf32>
    %182 = arith.mulf %174, %181 : vector<8x128xf32>
    %183 = arith.addf %180, %182 : vector<8x128xf32>
    %184 = arith.index_cast %c4_i32 : i32 to index
    %c0_50 = arith.constant 0 : index
    %c0_51 = arith.constant 0 : index
    %185 = vector.load %arg8[%184, %c0_50, %c0_51] : memref<8x8x128xf32, #tpu.memory_space<vmem>>, vector<1x8x128xf32>
    %186 = vector.shape_cast %185 : vector<1x8x128xf32> to vector<8x128xf32>
    %187 = vector.shape_cast %183 : vector<8x128xf32> to vector<1x8x128xf32>
    tpu.vector_store %arg8[%184, %c0_50, %c0_51], %187 {strides = array<i32>} : memref<8x8x128xf32, #tpu.memory_space<vmem>>, vector<1x8x128xf32>,
    %c5_i32 = arith.constant 5 : i32
    %188 = arith.index_cast %c5_i32 : i32 to index
    %c0_52 = arith.constant 0 : index
    %c0_53 = arith.constant 0 : index
    %189 = vector.load %arg10[%188, %c0_52, %c0_53] : memref<8x8x384xf32, #tpu.memory_space<vmem>>, vector<1x8x384xf32>
    %190 = vector.shape_cast %189 : vector<1x8x384xf32> to vector<8x384xf32>
    %191 = arith.truncf %183 : vector<8x128xf32> to vector<8x128xbf16>
    %cst_54 = arith.constant dense<0.000000e+00> : vector<8x384xf32>
    %192 = tpu.matmul %191, %13, %cst_54 {dimension_numbers = #tpu.dot_dimension_numbers<[1], [0], [0], [1], [0, 0, 1, 1], [], []>} : vector<8x128xbf16>, vector<128x384xbf16>, vector<8x384xf32> -> vector<8x384xf32>
    %193 = vector.extract_strided_slice %190 {offsets = [0, 0], sizes = [8, 128], strides = [1, 1]} : vector<8x384xf32> to vector<8x128xf32>
    %194 = vector.extract_strided_slice %192 {offsets = [0, 0], sizes = [8, 128], strides = [1, 1]} : vector<8x384xf32> to vector<8x128xf32>
    %195 = arith.addf %193, %194 : vector<8x128xf32>
    %196 = arith.negf %195 : vector<8x128xf32>
    %197 = math.exp %196 : vector<8x128xf32>
    %cst_55 = arith.constant 1.000000e+00 : f32
    %198 = vector.broadcast %cst_55 : f32 to vector<8x128xf32>
    %199 = arith.addf %198, %197 : vector<8x128xf32>
    %200 = arith.divf %198, %199 : vector<8x128xf32>
    %201 = vector.extract_strided_slice %190 {offsets = [0, 128], sizes = [8, 128], strides = [1, 1]} : vector<8x384xf32> to vector<8x128xf32>
    %202 = vector.extract_strided_slice %192 {offsets = [0, 128], sizes = [8, 128], strides = [1, 1]} : vector<8x384xf32> to vector<8x128xf32>
    %203 = arith.addf %201, %202 : vector<8x128xf32>
    %204 = arith.negf %203 : vector<8x128xf32>
    %205 = math.exp %204 : vector<8x128xf32>
    %cst_56 = arith.constant 1.000000e+00 : f32
    %206 = vector.broadcast %cst_56 : f32 to vector<8x128xf32>
    %207 = arith.addf %206, %205 : vector<8x128xf32>
    %208 = arith.divf %206, %207 : vector<8x128xf32>
    %209 = vector.extract_strided_slice %190 {offsets = [0, 256], sizes = [8, 128], strides = [1, 1]} : vector<8x384xf32> to vector<8x128xf32>
    %210 = vector.extract_strided_slice %192 {offsets = [0, 256], sizes = [8, 128], strides = [1, 1]} : vector<8x384xf32> to vector<8x128xf32>
    %211 = arith.addf %210, %16 : vector<8x128xf32>
    %212 = arith.mulf %200, %211 : vector<8x128xf32>
    %213 = arith.addf %209, %212 : vector<8x128xf32>
    %214 = math.tanh %213 : vector<8x128xf32>
    %215 = arith.subf %183, %214 : vector<8x128xf32>
    %216 = arith.mulf %208, %215 : vector<8x128xf32>
    %217 = arith.addf %214, %216 : vector<8x128xf32>
    %218 = arith.index_cast %c5_i32 : i32 to index
    %c0_57 = arith.constant 0 : index
    %c0_58 = arith.constant 0 : index
    %219 = vector.load %arg8[%218, %c0_57, %c0_58] : memref<8x8x128xf32, #tpu.memory_space<vmem>>, vector<1x8x128xf32>
    %220 = vector.shape_cast %219 : vector<1x8x128xf32> to vector<8x128xf32>
    %221 = vector.shape_cast %217 : vector<8x128xf32> to vector<1x8x128xf32>
    tpu.vector_store %arg8[%218, %c0_57, %c0_58], %221 {strides = array<i32>} : memref<8x8x128xf32, #tpu.memory_space<vmem>>, vector<1x8x128xf32>,
    %c6_i32 = arith.constant 6 : i32
    %222 = arith.index_cast %c6_i32 : i32 to index
    %c0_59 = arith.constant 0 : index
    %c0_60 = arith.constant 0 : index
    %223 = vector.load %arg10[%222, %c0_59, %c0_60] : memref<8x8x384xf32, #tpu.memory_space<vmem>>, vector<1x8x384xf32>
    %224 = vector.shape_cast %223 : vector<1x8x384xf32> to vector<8x384xf32>
    %225 = arith.truncf %217 : vector<8x128xf32> to vector<8x128xbf16>
    %cst_61 = arith.constant dense<0.000000e+00> : vector<8x384xf32>
    %226 = tpu.matmul %225, %13, %cst_61 {dimension_numbers = #tpu.dot_dimension_numbers<[1], [0], [0], [1], [0, 0, 1, 1], [], []>} : vector<8x128xbf16>, vector<128x384xbf16>, vector<8x384xf32> -> vector<8x384xf32>
    %227 = vector.extract_strided_slice %224 {offsets = [0, 0], sizes = [8, 128], strides = [1, 1]} : vector<8x384xf32> to vector<8x128xf32>
    %228 = vector.extract_strided_slice %226 {offsets = [0, 0], sizes = [8, 128], strides = [1, 1]} : vector<8x384xf32> to vector<8x128xf32>
    %229 = arith.addf %227, %228 : vector<8x128xf32>
    %230 = arith.negf %229 : vector<8x128xf32>
    %231 = math.exp %230 : vector<8x128xf32>
    %cst_62 = arith.constant 1.000000e+00 : f32
    %232 = vector.broadcast %cst_62 : f32 to vector<8x128xf32>
    %233 = arith.addf %232, %231 : vector<8x128xf32>
    %234 = arith.divf %232, %233 : vector<8x128xf32>
    %235 = vector.extract_strided_slice %224 {offsets = [0, 128], sizes = [8, 128], strides = [1, 1]} : vector<8x384xf32> to vector<8x128xf32>
    %236 = vector.extract_strided_slice %226 {offsets = [0, 128], sizes = [8, 128], strides = [1, 1]} : vector<8x384xf32> to vector<8x128xf32>
    %237 = arith.addf %235, %236 : vector<8x128xf32>
    %238 = arith.negf %237 : vector<8x128xf32>
    %239 = math.exp %238 : vector<8x128xf32>
    %cst_63 = arith.constant 1.000000e+00 : f32
    %240 = vector.broadcast %cst_63 : f32 to vector<8x128xf32>
    %241 = arith.addf %240, %239 : vector<8x128xf32>
    %242 = arith.divf %240, %241 : vector<8x128xf32>
    %243 = vector.extract_strided_slice %224 {offsets = [0, 256], sizes = [8, 128], strides = [1, 1]} : vector<8x384xf32> to vector<8x128xf32>
    %244 = vector.extract_strided_slice %226 {offsets = [0, 256], sizes = [8, 128], strides = [1, 1]} : vector<8x384xf32> to vector<8x128xf32>
    %245 = arith.addf %244, %16 : vector<8x128xf32>
    %246 = arith.mulf %234, %245 : vector<8x128xf32>
    %247 = arith.addf %243, %246 : vector<8x128xf32>
    %248 = math.tanh %247 : vector<8x128xf32>
    %249 = arith.subf %217, %248 : vector<8x128xf32>
    %250 = arith.mulf %242, %249 : vector<8x128xf32>
    %251 = arith.addf %248, %250 : vector<8x128xf32>
    %252 = arith.index_cast %c6_i32 : i32 to index
    %c0_64 = arith.constant 0 : index
    %c0_65 = arith.constant 0 : index
    %253 = vector.load %arg8[%252, %c0_64, %c0_65] : memref<8x8x128xf32, #tpu.memory_space<vmem>>, vector<1x8x128xf32>
    %254 = vector.shape_cast %253 : vector<1x8x128xf32> to vector<8x128xf32>
    %255 = vector.shape_cast %251 : vector<8x128xf32> to vector<1x8x128xf32>
    tpu.vector_store %arg8[%252, %c0_64, %c0_65], %255 {strides = array<i32>} : memref<8x8x128xf32, #tpu.memory_space<vmem>>, vector<1x8x128xf32>,
    %c7_i32 = arith.constant 7 : i32
    %256 = arith.index_cast %c7_i32 : i32 to index
    %c0_66 = arith.constant 0 : index
    %c0_67 = arith.constant 0 : index
    %257 = vector.load %arg10[%256, %c0_66, %c0_67] : memref<8x8x384xf32, #tpu.memory_space<vmem>>, vector<1x8x384xf32>
    %258 = vector.shape_cast %257 : vector<1x8x384xf32> to vector<8x384xf32>
    %259 = arith.truncf %251 : vector<8x128xf32> to vector<8x128xbf16>
    %cst_68 = arith.constant dense<0.000000e+00> : vector<8x384xf32>
    %260 = tpu.matmul %259, %13, %cst_68 {dimension_numbers = #tpu.dot_dimension_numbers<[1], [0], [0], [1], [0, 0, 1, 1], [], []>} : vector<8x128xbf16>, vector<128x384xbf16>, vector<8x384xf32> -> vector<8x384xf32>
    %261 = vector.extract_strided_slice %258 {offsets = [0, 0], sizes = [8, 128], strides = [1, 1]} : vector<8x384xf32> to vector<8x128xf32>
    %262 = vector.extract_strided_slice %260 {offsets = [0, 0], sizes = [8, 128], strides = [1, 1]} : vector<8x384xf32> to vector<8x128xf32>
    %263 = arith.addf %261, %262 : vector<8x128xf32>
    %264 = arith.negf %263 : vector<8x128xf32>
    %265 = math.exp %264 : vector<8x128xf32>
    %cst_69 = arith.constant 1.000000e+00 : f32
    %266 = vector.broadcast %cst_69 : f32 to vector<8x128xf32>
    %267 = arith.addf %266, %265 : vector<8x128xf32>
    %268 = arith.divf %266, %267 : vector<8x128xf32>
    %269 = vector.extract_strided_slice %258 {offsets = [0, 128], sizes = [8, 128], strides = [1, 1]} : vector<8x384xf32> to vector<8x128xf32>
    %270 = vector.extract_strided_slice %260 {offsets = [0, 128], sizes = [8, 128], strides = [1, 1]} : vector<8x384xf32> to vector<8x128xf32>
    %271 = arith.addf %269, %270 : vector<8x128xf32>
    %272 = arith.negf %271 : vector<8x128xf32>
    %273 = math.exp %272 : vector<8x128xf32>
    %cst_70 = arith.constant 1.000000e+00 : f32
    %274 = vector.broadcast %cst_70 : f32 to vector<8x128xf32>
    %275 = arith.addf %274, %273 : vector<8x128xf32>
    %276 = arith.divf %274, %275 : vector<8x128xf32>
    %277 = vector.extract_strided_slice %258 {offsets = [0, 256], sizes = [8, 128], strides = [1, 1]} : vector<8x384xf32> to vector<8x128xf32>
    %278 = vector.extract_strided_slice %260 {offsets = [0, 256], sizes = [8, 128], strides = [1, 1]} : vector<8x384xf32> to vector<8x128xf32>
    %279 = arith.addf %278, %16 : vector<8x128xf32>
    %280 = arith.mulf %268, %279 : vector<8x128xf32>
    %281 = arith.addf %277, %280 : vector<8x128xf32>
    %282 = math.tanh %281 : vector<8x128xf32>
    %283 = arith.subf %251, %282 : vector<8x128xf32>
    %284 = arith.mulf %276, %283 : vector<8x128xf32>
    %285 = arith.addf %282, %284 : vector<8x128xf32>
    %286 = arith.index_cast %c7_i32 : i32 to index
    %c0_71 = arith.constant 0 : index
    %c0_72 = arith.constant 0 : index
    %287 = vector.load %arg8[%286, %c0_71, %c0_72] : memref<8x8x128xf32, #tpu.memory_space<vmem>>, vector<1x8x128xf32>
    %288 = vector.shape_cast %287 : vector<1x8x128xf32> to vector<8x128xf32>
    %289 = vector.shape_cast %285 : vector<8x128xf32> to vector<1x8x128xf32>
    tpu.vector_store %arg8[%286, %c0_71, %c0_72], %289 {strides = array<i32>} : memref<8x8x128xf32, #tpu.memory_space<vmem>>, vector<1x8x128xf32>,
    %c8_i32 = arith.constant 8 : i32
    %c0_73 = arith.constant 0 : index
    %c0_74 = arith.constant 0 : index
    %290 = vector.load %arg9[%c0_73, %c0_74] : memref<8x128xf32, #tpu.memory_space<vmem>>, vector<8x128xf32>
    tpu.vector_store %arg9[%c0_73, %c0_74], %285 {strides = array<i32>} : memref<8x128xf32, #tpu.memory_space<vmem>>, vector<8x128xf32>,
    return
  }
  func.func @transform_0(%arg0: i32, %arg1: i32) -> (i32, i32, i32) {
    %c0_i32 = arith.constant 0 : i32
    %c0_i32_0 = arith.constant 0 : i32
    return %arg1, %arg0, %c0_i32 : i32, i32, i32
  }
  func.func @transform_1(%arg0: i32, %arg1: i32) -> (i32, i32) {
    %c0_i32 = arith.constant 0 : i32
    %c0_i32_0 = arith.constant 0 : i32
    return %arg0, %c0_i32 : i32, i32
  }
  func.func @transform_2(%arg0: i32, %arg1: i32) -> (i32, i32) {
    %c0_i32 = arith.constant 0 : i32
    %c0_i32_0 = arith.constant 0 : i32
    %c0_i32_1 = arith.constant 0 : i32
    return %c0_i32, %c0_i32_0 : i32, i32
  }
  func.func @transform_3(%arg0: i32, %arg1: i32) -> (i32, i32) {
    %c0_i32 = arith.constant 0 : i32
    %c0_i32_0 = arith.constant 0 : i32
    %c0_i32_1 = arith.constant 0 : i32
    return %c0_i32, %c0_i32_0 : i32, i32
  }
  func.func @transform_4(%arg0: i32, %arg1: i32) -> (i32, i32) {
    %c0_i32 = arith.constant 0 : i32
    %c0_i32_0 = arith.constant 0 : i32
    %c0_i32_1 = arith.constant 0 : i32
    return %c0_i32, %c0_i32_0 : i32, i32
  }
  func.func @transform_5(%arg0: i32, %arg1: i32) -> (i32, i32) {
    %c0_i32 = arith.constant 0 : i32
    %c0_i32_0 = arith.constant 0 : i32
    %c0_i32_1 = arith.constant 0 : i32
    return %c0_i32, %c0_i32_0 : i32, i32
  }
  func.func @transform_6(%arg0: i32, %arg1: i32) -> (i32, i32, i32) {
    %c0_i32 = arith.constant 0 : i32
    %c0_i32_0 = arith.constant 0 : i32
    return %arg1, %arg0, %c0_i32 : i32, i32, i32
  }
  func.func @transform_7(%arg0: i32, %arg1: i32) -> (i32, i32) {
    %c0_i32 = arith.constant 0 : i32
    %c0_i32_0 = arith.constant 0 : i32
    return %arg0, %c0_i32 : i32, i32
  }
}

</mosaic_0001>

<bundles_post_ra>
// kernel: gru_forward.1
= control target key start
LH: loop header
LB: loop body
LE: loop exit
PB: predicated region body
PF: predicated region fallthrough
CT: control target
= control target key end

     0   :  { %13 = vsyncpa [#allocation4], 0  ;;  %s2564_s0 = inlined_call_operand.vmem [shape: f32[8,8,128], index: 0, kind: input, shape index: {}]   ;;  %s2565_s1 = inlined_call_operand.vmem [shape: f32[8,128], index: 1, kind: input, shape index: {}]   ;;  %s2566_s2 = inlined_call_operand.hbm [shape: bf16[128,384], index: 2, kind: input, shape index: {}]   ;;  %s2567_s3 = inlined_call_operand.hbm [shape: bf16[128,384], index: 3, kind: input, shape index: {}]   ;;  %s2568_s4 = inlined_call_operand.vmem [shape: f32[1,384], index: 4, kind: input, shape index: {}]   ;;  %s2569_s5 = inlined_call_operand.vmem [shape: f32[1,128], index: 5, kind: input, shape index: {}]   ;;  %s2570_s6 = inlined_call_operand.vmem [shape: f32[8,8,128], index: 6, kind: output, shape index: {0}]   ;;  %s2571_s7 = inlined_call_operand.vmem [shape: f32[8,128], index: 7, kind: output, shape index: {1}]  }
   0x1   :  { %14 = vsyncpa [#allocation6], 0  ;;  %s2015_s24 = smov [#allocation3]  }
   0x2   :  { %s24_s25 = sshll.u32 %s2015_s24, 4  ;;  %s25_s25 = int_to_ptr.vmem [resolvable:$true] %s24_s25 }
   0x3   :  { %s1979_s26 = scalar_lea.vmem %s25_s25, 3072  ;;  %p1984_p1 = scmp.lt.s32.totalorder %s25_s25, %s25_s25 }
   0x4   :  { %p1980_p0 = scmp.ne.s32.totalorder %s25_s25, %s1979_s26  ;;  %p1985_p2 = scmp.lt.s32.totalorder %s1979_s26, %s1979_s26 }
   0x6   :  { %p1986_p3 = por %p1985_p2, %p1984_p1 }
   0x8   :  { %p1987_p4 = pnand %p1986_p3, %p1980_p0 }
   0xa   :  { %1990 = shalt.err (!%p1987_p4)
}
   0xb   :  { %s2016_s27 = smov 192   ;;  %s2017_s28 = smov 12  }
   0xc   :  { %30 = dma.hbm_to_vmem [thread:$0]  %s2566_s2, 3072, %s25_s25, [#allocation4], %s2016_s27, %s2016_s27, %s2017_s28  }
   0xd   :  { %s2018_s8 = smov [#allocation5]  }
   0xe   :  { %s36_s9 = sshll.u32 %s2018_s8, 4  ;;  %s37_s9 = int_to_ptr.vmem [resolvable:$true] %s36_s9 }
   0xf   :  { %s1999_s10 = scalar_lea.vmem %s37_s9, 3072  ;;  %p2004_p6 = scmp.lt.s32.totalorder %s37_s9, %s37_s9 }
  0x10   :  { %p2000_p5 = scmp.ne.s32.totalorder %s37_s9, %s1999_s10  ;;  %p2005_p7 = scmp.lt.s32.totalorder %s1999_s10, %s1999_s10 }
  0x12   :  { %p2006_p8 = por %p2005_p7, %p2004_p6 }
  0x14   :  { %p2007_p9 = pnand %p2006_p8, %p2000_p5 }
  0x16   :  { %2010 = shalt.err (!%p2007_p9)
}
  0x17   :  { %42 = dma.hbm_to_vmem [thread:$0]  %s2567_s3, 3072, %s37_s9, [#allocation6], %s2016_s27, %s2016_s27, %s2017_s28  }
  0x18   :  { %2011 = dma.done.wait [#allocation4], 3072  }
  0x19   :  { %2012 = vsyncadd [#allocation4], 4294964224 }
  0x1a   :  { %2013 = dma.done.wait [#allocation6], 3072  }
  0x1b   :  { %2014 = vsyncadd [#allocation6], 4294964224  ;;  %v2572_v0 = vmov 0   ;;  %v1807_v1 = vld [vmem:[#allocation3 + $0xac] ss:$12 sps:$4 sm:$0xff]   ;;  %v60_v12 = vld [vmem:[%s2564_s0] sm:$0xff] }
  0x1c   :  { %281 = vmatprep.mubr.bf16.mxu0 %v2572_v0  ;;  %v1809_v2 = vld [vmem:[#allocation3 + $0xa8] ss:$12 sps:$4 sm:$0xff]   ;;  %249 = vmatprep.subr.bf16.mxu0 %v1807_v1  ;;  %v1812_v4 = vld [vmem:[#allocation3 + $0x90] ss:$12 sps:$4 sm:$0xff]   ;;  %v1815_v6 = vld [vmem:[#allocation3 + $0x78] ss:$12 sps:$4 sm:$0xff]   ;;  %v106_v1 = vlaneseq }
  0x1d   :  { %v1810_v3 = vld [vmem:[#allocation3 + $0x94] ss:$12 sps:$4 sm:$0xff]   ;;  %250 = vmatpush1.bf16.msra.mxu0 %v1809_v2  ;;  %v1813_v5 = vld [vmem:[#allocation3 + $0x7c] ss:$12 sps:$4 sm:$0xff]   ;;  %v1816_v7 = vld [vmem:[#allocation3 + $0x64] ss:$12 sps:$4 sm:$0xff]  }
  0x1e   :  { %251 = vmatprep.subr.bf16.mxu0 %v1810_v3  ;;  %v1828_v8 = vld [vmem:[#allocation3 + $0xb0] ss:$12 sps:$4 sm:$0xff]   ;;  %v1818_v9 = vld [vmem:[#allocation3 + $0x60] ss:$12 sps:$4 sm:$0xff]   ;;  %v1832_v11 = vld [vmem:[#allocation3 + $0x98] ss:$12 sps:$4 sm:$0xff]  }
  0x1f   :  { %v1819_v10 = vld [vmem:[#allocation3 + $0x4c] ss:$12 sps:$4 sm:$0xff]   ;;  %1616 = vmatprep.subr.bf16.mxu1 %v1828_v8  ;;  %v1821_v14 = vld [vmem:[#allocation3 + $0x48] ss:$12 sps:$4 sm:$0xff]   ;;  %v1824_v19 = vld [vmem:[#allocation3 + $0x30] ss:$12 sps:$4 sm:$0xff]  }
  0x20   :  { %1617 = vmatpush3.bf16.msra.mxu1 %v1828_v8  ;;  %v61_v13 = vld [vmem:[%s2564_s0 + $0x8] sm:$0xff]  ;;  %v1822_v17 = vld [vmem:[#allocation3 + $0x34] ss:$12 sps:$4 sm:$0xff]   ;;  %v1844_v21 = vld [vmem:[#allocation3 + $0x50] ss:$12 sps:$4 sm:$0xff]   ;;  %v2574_v41 = vmov 0.0  }
  0x21   :  { %252 = vmatpush1.bf16.msra.mxu0 %v1812_v4  ;;  %1618 = vmatprep.subr.bf16.mxu1 %v1832_v11  ;;  %v68_v15 = vpack.c.bf16 %v61_v13, %v60_v12  ;;  %v1836_v16 = vld [vmem:[#allocation3 + $0x80] ss:$12 sps:$4 sm:$0xff]   ;;  %v1840_v18 = vld [vmem:[#allocation3 + $0x68] ss:$12 sps:$4 sm:$0xff]   ;;  %v1827_v22 = vld [vmem:[#allocation3 + $0x18] ss:$12 sps:$4 sm:$0xff]  }
  0x22   :  { %253 = vmatprep.subr.bf16.mxu0 %v1813_v5  ;;  %v1825_v20 = vld [vmem:[#allocation3 + $0x1c] ss:$12 sps:$4 sm:$0xff]   ;;  %v1829_v23 = vld [vmem:[#allocation3 + $0x4] ss:$12 sps:$4 sm:$0xff]   ;;  %v1831_v25 = vld [vmem:[#allocation3] ss:$12 sps:$4 sm:$0xff]  }
  0x23   :  { %1632 = vmatprep.mubr.bf16.mxu1 %v68_v15  ;;  %v1848_v24 = vld [vmem:[#allocation3 + $0x38] ss:$12 sps:$4 sm:$0xff]   ;;  %v1852_v27 = vld [vmem:[#allocation3 + $0x20] ss:$12 sps:$4 sm:$0xff]   ;;  %v2077_v28 = vld [vmem:[#allocation5 + $0xa8] ss:$12 sps:$4 sm:$0xff]  }
  0x24   :  { %1619 = vmatpush3.bf16.msra.mxu1 %v1832_v11  ;;  %v2075_v26 = vld [vmem:[#allocation5 + $0xac] ss:$12 sps:$4 sm:$0xff]   ;;  %v2080_v29 = vld [vmem:[#allocation5 + $0x94] ss:$12 sps:$4 sm:$0xff]   ;;  %v2082_v30 = vld [vmem:[#allocation5 + $0x90] ss:$12 sps:$4 sm:$0xff]  }
  0x25   :  { %254 = vmatpush1.bf16.msra.mxu0 %v1815_v6  ;;  %1620 = vmatprep.subr.bf16.mxu1 %v1836_v16  ;;  %v62_v31 = vld [vmem:[%s2564_s0 + $0x10] sm:$0xff]  ;;  %v63_v33 = vld [vmem:[%s2564_s0 + $0x18] sm:$0xff]  ;;  %v64_v38 = vld [vmem:[%s2564_s0 + $0x20] sm:$0xff]  ;;  %vm2021_vm0 = vmmov 0   ;;  %v107_v2 = vshrl.u32 %v106_v1, 7 }
  0x26   :  { %255 = vmatprep.subr.bf16.mxu0 %v1816_v7  ;;  %v1856_v32 = vld [vmem:[#allocation3 + $0x8] ss:$12 sps:$4 sm:$0xff]   ;;  %v69_v35 = vpack.c.bf16 %v63_v33, %v62_v31  ;;  %v2096_v36 = vld [vmem:[#allocation5 + $0x78] ss:$12 sps:$4 sm:$0xff]   ;;  %v2107_v40 = vld [vmem:[#allocation5 + $0xb0] ss:$12 sps:$4 sm:$0xff]  }
  0x27   :  { %v2093_v34 = vld [vmem:[#allocation5 + $0x7c] ss:$12 sps:$4 sm:$0xff]   ;;  %v2099_v37 = vld [vmem:[#allocation5 + $0x64] ss:$12 sps:$4 sm:$0xff]   ;;  %v2111_v42 = vld [vmem:[#allocation5 + $0x60] ss:$12 sps:$4 sm:$0xff]  }
  0x28   :  { %1621 = vmatpush3.bf16.msra.mxu1 %v1836_v16  ;;  %v65_v39 = vld [vmem:[%s2564_s0 + $0x28] sm:$0xff]  ;;  %v2118_v45 = vld [vmem:[#allocation5 + $0x98] ss:$12 sps:$4 sm:$0xff]   ;;  %v66_v47 = vld [vmem:[%s2564_s0 + $0x30] sm:$0xff]  ;;  %v108_v3 = vsub.s32 0, %v107_v2  ;;  %v112_v6 = vsub.s32 1, %v107_v2 }
  0x29   :  { %256 = vmatpush1.bf16.msra.mxu0 %v1818_v9  ;;  %1622 = vmatprep.subr.bf16.mxu1 %v1840_v18  ;;  %v70_v43 = vpack.c.bf16 %v65_v39, %v64_v38  ;;  %v2115_v44 = vld [vmem:[#allocation5 + $0x4c] ss:$12 sps:$4 sm:$0xff]   ;;  %v2122_v46 = vld [vmem:[#allocation5 + $0x48] ss:$12 sps:$4 sm:$0xff]   ;;  %v2138_v52 = vld [vmem:[#allocation5 + $0x30] ss:$12 sps:$4 sm:$0xff]  }
  0x2a   :  { %257 = vmatprep.subr.bf16.mxu0 %v1819_v10  ;;  %v67_v48 = vld [vmem:[%s2564_s0 + $0x38] sm:$0xff]  ;;  %v2131_v49 = vld [vmem:[#allocation5 + $0x34] ss:$12 sps:$4 sm:$0xff]   ;;  %v2154_v56 = vld [vmem:[#allocation5 + $0x4] ss:$12 sps:$4 sm:$0xff]   ;;  %v116_v9 = vsub.s32 2, %v107_v2 }
  0x2b   :  { %v2134_v50 = vld [vmem:[#allocation5 + $0x80] ss:$12 sps:$4 sm:$0xff]   ;;  %v71_v51 = vpack.c.bf16 %v67_v48, %v66_v47  ;;  %v2142_v53 = vld [vmem:[#allocation5 + $0x1c] ss:$12 sps:$4 sm:$0xff]   ;;  %v2151_v55 = vld [vmem:[#allocation5 + $0x18] ss:$12 sps:$4 sm:$0xff]  }
  0x2c   :  { %1623 = vmatpush3.bf16.msra.mxu1 %v1840_v18  ;;  %v2145_v54 = vld [vmem:[#allocation5 + $0x68] ss:$12 sps:$4 sm:$0xff]   ;;  %v2157_v57 = vld [vmem:[#allocation5 + $0x50] ss:$12 sps:$4 sm:$0xff]   ;;  %v2161_v58 = vld [vmem:[#allocation5] ss:$12 sps:$4 sm:$0xff]  }
  0x2d   :  { %258 = vmatpush1.bf16.msra.mxu0 %v1821_v14  ;;  %1624 = vmatprep.subr.bf16.mxu1 %v1844_v21  ;;  %v2167_v59 = vld [vmem:[%s2565_s1] sm:$0xff]  ;;  %v2186_v63 = vld [vmem:[#allocation5 + $0x8] ss:$12 sps:$4 sm:$0xff]  }
  0x2e   :  { %259 = vmatprep.subr.bf16.mxu0 %v1822_v17  ;;  %v2171_v60 = vld [vmem:[#allocation5 + $0x38] ss:$12 sps:$4 sm:$0xff]   ;;  %v454_v61 = vpack.c.bf16 %v2167_v59, %v2167_v59  ;;  %v2179_v62 = vld [vmem:[#allocation5 + $0x20] ss:$12 sps:$4 sm:$0xff]  }
  0x2f   :  { %v104_v4 = vld [vmem:[%s2568_s4] sm:$0x7] }
  0x30   :  { %1625 = vmatpush3.bf16.msra.mxu1 %v1844_v21  ;;  %v109_v8 = vrot.slane %v104_v4, %v108_v3  ;;  %v113_v11 = vrot.slane %v104_v4, %v112_v6 }
  0x31   :  { %260 = vmatpush1.bf16.msra.mxu0 %v1824_v19  ;;  %1626 = vmatprep.subr.bf16.mxu1 %v1848_v24 }
  0x32   :  { %261 = vmatprep.subr.bf16.mxu0 %v1825_v20 }
  0x34   :  { %1627 = vmatpush3.bf16.msra.mxu1 %v1848_v24 }
  0x35   :  { %262 = vmatpush1.bf16.msra.mxu0 %v1827_v22  ;;  %1628 = vmatprep.subr.bf16.mxu1 %v1852_v27 }
  0x36   :  { %263 = vmatprep.subr.bf16.mxu0 %v1829_v23 }
  0x38   :  { %1629 = vmatpush3.bf16.msra.mxu1 %v1852_v27 }
  0x39   :  { %264 = vmatpush1.bf16.msra.mxu0 %v1831_v25  ;;  %1630 = vmatprep.subr.bf16.mxu1 %v1856_v32 }
  0x3a   :  { %583 = vmatprep.subr.bf16.mxu0 %v2075_v26 }
  0x3c   :  { %282 = vmatmul.mubr.bf16.vlgmr.msra.gmra.mxu0 %v68_v15  ;;  %1631 = vmatpush3.bf16.msra.mxu1 %v1856_v32  ;;  %v2230_v15 = vrot.slane %v104_v4, %v116_v9 }
  0x3d   :  { %584 = vmatpush1.bf16.msra.mxu0 %v2077_v28  ;;  %291 = vmatprep.mubr.bf16.mxu0 %v2572_v0 }
  0x3e   :  { %585 = vmatprep.subr.bf16.mxu0 %v2080_v29  ;;  %1640 = vmatprep.subr.bf16.mxu1 %v2574_v41 }
  0x3f   :  { %1633 = vmatmul.mubr.bf16.vlgmr.msra.gmra.mxu1 %v69_v35 }
  0x40   :  { %1641 = vmatpush3.bf16.msra.mxu1 %v2107_v40  ;;  %1636 = vmatprep.mubr.bf16.mxu1 %v70_v43 }
  0x41   :  { %586 = vmatpush1.bf16.msra.mxu0 %v2082_v30  ;;  %1642 = vmatprep.subr.bf16.mxu1 %v2574_v41 }
  0x42   :  { %587 = vmatprep.subr.bf16.mxu0 %v2093_v34 }
  0x44   :  { %292 = vmatmul.mubr.bf16.gmra.mxu0 %v69_v35  ;;  %1643 = vmatpush3.bf16.msra.mxu1 %v2118_v45 }
  0x45   :  { %588 = vmatpush1.bf16.msra.mxu0 %v2096_v36  ;;  %301 = vmatprep.mubr.bf16.mxu0 %v2572_v0 }
  0x46   :  { %589 = vmatprep.subr.bf16.mxu0 %v2099_v37  ;;  %1644 = vmatprep.subr.bf16.mxu1 %v2574_v41 }
  0x47   :  { %1637 = vmatmul.mubr.bf16.gmra.mxu1 %v71_v51 }
  0x48   :  { %1645 = vmatpush3.bf16.msra.mxu1 %v2134_v50  ;;  %1656 = vmatprep.mubr.msk.bf16.mxu1 %vm2021_vm0, %v2574_v41 }
  0x49   :  { %590 = vmatpush1.bf16.msra.mxu0 %v2111_v42  ;;  %1646 = vmatprep.subr.bf16.mxu1 %v2574_v41 }
  0x4a   :  { %591 = vmatprep.subr.bf16.mxu0 %v2115_v44 }
  0x4c   :  { %302 = vmatmul.mubr.bf16.gmra.mxu0 %v70_v43  ;;  %1647 = vmatpush3.bf16.msra.mxu1 %v2145_v54 }
  0x4d   :  { %592 = vmatpush1.bf16.msra.mxu0 %v2122_v46  ;;  %311 = vmatprep.mubr.bf16.mxu0 %v2572_v0 }
  0x4e   :  { %593 = vmatprep.subr.bf16.mxu0 %v2131_v49  ;;  %1648 = vmatprep.subr.bf16.mxu1 %v2574_v41 }
  0x50   :  { %1649 = vmatpush3.bf16.msra.mxu1 %v2157_v57 }
  0x51   :  { %594 = vmatpush1.bf16.msra.mxu0 %v2138_v52  ;;  %1650 = vmatprep.subr.bf16.mxu1 %v2574_v41 }
  0x52   :  { %595 = vmatprep.subr.bf16.mxu0 %v2142_v53 }
  0x54   :  { %312 = vmatmul.mubr.bf16.gmra.mxu0 %v71_v51  ;;  %1651 = vmatpush3.bf16.msra.mxu1 %v2171_v60 }
  0x55   :  { %596 = vmatpush1.bf16.msra.mxu0 %v2151_v55  ;;  %615 = vmatprep.mubr.bf16.mxu0 %v2572_v0 }
  0x56   :  { %597 = vmatprep.subr.bf16.mxu0 %v2154_v56  ;;  %1652 = vmatprep.subr.bf16.mxu1 %v2574_v41 }
  0x58   :  { %1653 = vmatpush3.bf16.msra.mxu1 %v2179_v62 }
  0x59   :  { %598 = vmatpush1.bf16.msra.mxu0 %v2161_v58  ;;  %1654 = vmatprep.subr.bf16.mxu1 %v2574_v41 }
  0x5a   :  { %691 = vmatprep.subr.bf16.mxu0 %v2075_v26 }
  0x5c   :  { %616 = vmatmul.mubr.bf16.vlgmr.msra.gmra.mxu0 %v454_v61  ;;  %1655 = vmatpush3.bf16.msra.mxu1 %v2186_v63 }
  0x5d   :  { %692 = vmatpush1.bf16.msra.mxu0 %v2077_v28  ;;  %723 = vmatprep.mubr.bf16.mxu0 %v2572_v0 }
  0x5e   :  { %693 = vmatprep.subr.bf16.mxu0 %v2080_v29  ;;  %1660 = vmatprep.subr.bf16.mxu1 %v2574_v41 }
  0x5f   :  { %1657 = vmatmul.mubr.bf16.vlgmr.msra.gmra.mxu1 %v454_v61 }
  0x60   :  { %1661 = vmatpush3.bf16.msra.mxu1 %v2107_v40  ;;  %1676 = vmatprep.mubr.msk.bf16.mxu1 %vm2021_vm0, %v2574_v41 }
  0x61   :  { %694 = vmatpush1.bf16.msra.mxu0 %v2082_v30  ;;  %1662 = vmatprep.subr.bf16.mxu1 %v2574_v41 }
  0x62   :  { %695 = vmatprep.subr.bf16.mxu0 %v2093_v34 }
  0x64   :  { %1663 = vmatpush3.bf16.msra.mxu1 %v2118_v45 }
  0x65   :  { %696 = vmatpush1.bf16.msra.mxu0 %v2096_v36  ;;  %1664 = vmatprep.subr.bf16.mxu1 %v2574_v41 }
  0x66   :  { %697 = vmatprep.subr.bf16.mxu0 %v2099_v37 }
  0x68   :  { %1665 = vmatpush3.bf16.msra.mxu1 %v2134_v50 }
  0x69   :  { %698 = vmatpush1.bf16.msra.mxu0 %v2111_v42  ;;  %1666 = vmatprep.subr.bf16.mxu1 %v2574_v41 }
  0x6a   :  { %699 = vmatprep.subr.bf16.mxu0 %v2115_v44 }
  0x6c   :  { %1667 = vmatpush3.bf16.msra.mxu1 %v2145_v54 }
  0x6d   :  { %700 = vmatpush1.bf16.msra.mxu0 %v2122_v46  ;;  %1668 = vmatprep.subr.bf16.mxu1 %v2574_v41 }
  0x6e   :  { %701 = vmatprep.subr.bf16.mxu0 %v2131_v49 }
  0x70   :  { %1669 = vmatpush3.bf16.msra.mxu1 %v2157_v57 }
  0x71   :  { %702 = vmatpush1.bf16.msra.mxu0 %v2138_v52  ;;  %1670 = vmatprep.subr.bf16.mxu1 %v2574_v41 }
  0x72   :  { %703 = vmatprep.subr.bf16.mxu0 %v2142_v53 }
  0x74   :  { %1671 = vmatpush3.bf16.msra.mxu1 %v2171_v60 }
  0x75   :  { %704 = vmatpush1.bf16.msra.mxu0 %v2151_v55  ;;  %1672 = vmatprep.subr.bf16.mxu1 %v2574_v41 }
  0x76   :  { %705 = vmatprep.subr.bf16.mxu0 %v2154_v56 }
  0x78   :  { %1673 = vmatpush3.bf16.msra.mxu1 %v2179_v62 }
  0x79   :  { %706 = vmatpush1.bf16.msra.mxu0 %v2161_v58  ;;  %1674 = vmatprep.subr.bf16.mxu1 %v2574_v41 }
  0x7a   :  { %800 = vmatprep.subr.bf16.mxu0 %v2075_v26 }
  0x7c   :  { %1675 = vmatpush3.bf16.msra.mxu1 %v2186_v63 }
  0x7d   :  { %1680 = vmatprep.subr.bf16.mxu1 %v2574_v41 }
  0xfc   :  { %v283_v5 = vpop.f32.mrf.mxu0 }
  0xfe   :  { %v285_v7 = vpop.f32.mrf.mxu0 }
  0xff   :  { %v1634_v19 = vpop.f32.mrf.mxu1  ;;  %v286_v41 = vadd.f32 %v285_v7, %v113_v11 }
 0x100   :  { %v287_v10 = vpop.f32.mrf.mxu0  ;;  %v2237_v21 = vadd.f32 %v1634_v19, %v2230_v15 }
 0x101   :  { %v2226_v12 = vadd.f32 %v287_v10, %v109_v8  ;;  %v356_v23 = vpop.f32.mrf.mxu1 }
 0x102   :  { %v289_v13 = vpop.f32.mrf.mxu0  ;;  %v357_v7 = vadd.f32 %v356_v23, %v2230_v15  ;;  %v2582_v23 = vmov 0  }
 0x103   :  { %v2228_v14 = vadd.f32 %v289_v13, %v113_v11  ;;  %v1635_v27 = vpop.f32.mrf.mxu1 }
 0x104   :  { %v293_v16 = vpop.f32.mrf.mxu0  ;;  %v2244_v32 = vadd.f32 %v1635_v27, %v2230_v15 }
 0x105   :  { %v2232_v17 = vadd.f32 %v293_v16, %v109_v8  ;;  %v359_v35 = vpop.f32.mrf.mxu1 }
 0x106   :  { %v295_v18 = vpop.f32.mrf.mxu0  ;;  %v2249_v39 = vadd.f32 %v359_v35, %v2230_v15 }
 0x107   :  { %v2234_v20 = vadd.f32 %v295_v18, %v113_v11  ;;  %v1638_v47 = vpop.f32.mrf.mxu1 }
 0x108   :  { %v297_v22 = vpop.f32.mrf.mxu0  ;;  %v2254_v51 = vadd.f32 %v1638_v47, %v2230_v15 }
 0x109   :  { %v2239_v24 = vadd.f32 %v297_v22, %v109_v8  ;;  %v372_v1 = vpop.f32.mrf.mxu1 }
 0x10a   :  { %v299_v25 = vpop.f32.mrf.mxu0  ;;  %2576 = vst [vmem:[#allocation9_spill] sm:$0xff] %v2254_v51  ;;  %v2259_v3 = vadd.f32 %v372_v1, %v2230_v15 }
 0x10b   :  { %v2241_v31 = vadd.f32 %v299_v25, %v113_v11  ;;  %v1639_v6 = vpop.f32.mrf.mxu1 }
 0x10c   :  { %v303_v33 = vpop.f32.mrf.mxu0  ;;  %v2264_v10 = vadd.f32 %v1639_v6, %v2230_v15 }
 0x10d   :  { %v2246_v38 = vadd.f32 %v303_v33, %v109_v8  ;;  %v375_v16 = vpop.f32.mrf.mxu1 }
 0x10e   :  { %v305_v43 = vpop.f32.mrf.mxu0  ;;  %2577 = vst [vmem:[#allocation10_spill] sm:$0xff] %v2264_v10  ;;  %v2269_v19 = vadd.f32 %v375_v16, %v2230_v15 }
 0x10f   :  { %v2251_v48 = vadd.f32 %v305_v43, %v113_v11  ;;  %v284_v43 = vadd.f32 %v283_v5, %v109_v8  ;;  %v2280_v5 = vld [vmem:[%s2569_s5] ss:$0 sm:$0xff] }
 0x110   :  { %v307_v61 = vpop.f32.mrf.mxu0 }
 0x111   :  { %v2256_v2 = vadd.f32 %v307_v61, %v109_v8 }
 0x112   :  { %v309_v4 = vpop.f32.mrf.mxu0 }
 0x113   :  { %v2261_v9 = vadd.f32 %v309_v4, %v113_v11 }
 0x114   :  { %v313_v13 = vpop.f32.mrf.mxu0 }
 0x115   :  { %v2266_v18 = vadd.f32 %v313_v13, %v109_v8 }
 0x116   :  { %v315_v22 = vpop.f32.mrf.mxu0 }
 0x117   :  { %2578 = vst [vmem:[#allocation11_spill] sm:$0xff] %v2266_v18  ;;  %v2271_v25 = vadd.f32 %v315_v22, %v113_v11 }
 0x118   :  { %v317_v27 = vpop.f32.mrf.mxu0 }
 0x119   :  { %2579 = vst [vmem:[#allocation12_spill] sm:$0xff] %v2271_v25  ;;  %v2273_v33 = vadd.f32 %v317_v27, %v109_v8 }
 0x11a   :  { %v319_v35 = vpop.f32.mrf.mxu0 }
 0x11b   :  { %2580 = vst [vmem:[#allocation13_spill] sm:$0xff] %v2273_v33  ;;  %v2275_v47 = vadd.f32 %v319_v35, %v113_v11 }
 0x11c   :  { %v617_v61 = vpop.f32.mrf.mxu0 }
 0x11d   :  { %v664_v1 = vadd.f32 %v617_v61, %v284_v43 }
 0x11e   :  { %v619_v4 = vpop.f32.mrf.mxu0 }
 0x11f   :  { %v1509_v6 = vmul.f32 -1.442695, %v664_v1  ;;  %v658_v16 = vpop.f32.mrf.mxu1  ;;  %v671_v10 = vadd.f32 %v619_v4, %v286_v41 }
 0x120   :  { %v621_v0 = vpop.f32.mrf.mxu0 }
 0x121   :  { %1871 = vpow2.f32 %v1509_v6  ;;  %v1658_v51 = vpop.f32.mrf.mxu1  ;;  %v1510_v25 = vmul.f32 -1.442695, %v671_v10  ;;  %v678_v0 = vadd.f32 %v2280_v5, %v658_v16 }
 0x122   :  { %v622_v13 = vpop.f32.mrf.mxu0 }
 0x123   :  { %v661_v22 = vpop.f32.mrf.mxu1  ;;  %1873 = vpow2.f32 %v1510_v25 }
 0x125   :  { %v1659_v18 = vpop.f32.mrf.mxu1 }
 0x12e   :  { %v1872_v27 = vpop.eup %1871 }
 0x12f   :  { %v668_v33 = vadd.f32 1.0, %v1872_v27 }
 0x130   :  { %v1874_v8 = vpop.eup %1873 }
 0x131   :  { %1875 = vrcp.f32 %v668_v33  ;;  %v675_v11 = vadd.f32 1.0, %v1874_v8 }
 0x13e   :  { %v1876_v35 = vpop.eup %1875 }
 0x13f   :  { %v679_v41 = vmul.f32 %v1876_v35, %v678_v0 }
 0x141   :  { %v680_v51 = vadd.f32 %v679_v41, %v357_v7 }
 0x143   :  { %1877 = vtanh.f32 %v680_v51 }
 0x144   :  { %1879 = vrcp.f32 %v675_v11 }
 0x150   :  { %v1878_v10 = vpop.eup %1877 }
 0x151   :  { %v682_v18 = vsub.f32 %v2167_v59, %v1878_v10  ;;  %v1880_v25 = vpop.eup %1879  ;;  %v2581_v59 = vmov 0.0  }
 0x153   :  { %v683_v33 = vmul.f32 %v1880_v25, %v682_v18 }
 0x155   :  { %v2285_v43 = vadd.f32 %v1878_v10, %v683_v33 }
 0x157   :  { %685 = vst [vmem:[%s2570_s6] sm:$0xff] %v2285_v43  ;;  %v690_v15 = vpack.c.bf16 %v2285_v43, %v2285_v43 }
 0x159   :  { %724 = vmatmul.mubr.bf16.vlgmr.msra.gmra.mxu0 %v690_v15  ;;  %1677 = vmatmul.mubr.bf16.vlgmr.msra.gmra.mxu1 %v690_v15 }
 0x15a   :  { %801 = vmatpush1.bf16.msra.mxu0 %v2077_v28  ;;  %1681 = vmatpush3.bf16.msra.mxu1 %v2107_v40 }
 0x15b   :  { %802 = vmatprep.subr.bf16.mxu0 %v2080_v29  ;;  %1682 = vmatprep.subr.bf16.mxu1 %v2581_v59 }
 0x15c   :  { %832 = vmatprep.mubr.bf16.mxu0 %v2582_v23  ;;  %1696 = vmatprep.mubr.msk.bf16.mxu1 %vm2021_vm0, %v2581_v59 }
 0x15e   :  { %803 = vmatpush1.bf16.msra.mxu0 %v2082_v30  ;;  %1683 = vmatpush3.bf16.msra.mxu1 %v2118_v45 }
 0x15f   :  { %804 = vmatprep.subr.bf16.mxu0 %v2093_v34  ;;  %1684 = vmatprep.subr.bf16.mxu1 %v2581_v59 }
 0x162   :  { %805 = vmatpush1.bf16.msra.mxu0 %v2096_v36  ;;  %1685 = vmatpush3.bf16.msra.mxu1 %v2134_v50 }
 0x163   :  { %806 = vmatprep.subr.bf16.mxu0 %v2099_v37  ;;  %1686 = vmatprep.subr.bf16.mxu1 %v2581_v59 }
 0x166   :  { %807 = vmatpush1.bf16.msra.mxu0 %v2111_v42  ;;  %1687 = vmatpush3.bf16.msra.mxu1 %v2145_v54 }
 0x167   :  { %808 = vmatprep.subr.bf16.mxu0 %v2115_v44  ;;  %1688 = vmatprep.subr.bf16.mxu1 %v2581_v59 }
 0x16a   :  { %809 = vmatpush1.bf16.msra.mxu0 %v2122_v46  ;;  %1689 = vmatpush3.bf16.msra.mxu1 %v2157_v57 }
 0x16b   :  { %810 = vmatprep.subr.bf16.mxu0 %v2131_v49  ;;  %1690 = vmatprep.subr.bf16.mxu1 %v2581_v59 }
 0x16e   :  { %811 = vmatpush1.bf16.msra.mxu0 %v2138_v52  ;;  %1691 = vmatpush3.bf16.msra.mxu1 %v2171_v60 }
 0x16f   :  { %812 = vmatprep.subr.bf16.mxu0 %v2142_v53  ;;  %1692 = vmatprep.subr.bf16.mxu1 %v2581_v59 }
 0x172   :  { %813 = vmatpush1.bf16.msra.mxu0 %v2151_v55  ;;  %1693 = vmatpush3.bf16.msra.mxu1 %v2179_v62 }
 0x173   :  { %814 = vmatprep.subr.bf16.mxu0 %v2154_v56  ;;  %1694 = vmatprep.subr.bf16.mxu1 %v2581_v59 }
 0x176   :  { %815 = vmatpush1.bf16.msra.mxu0 %v2161_v58  ;;  %1695 = vmatpush3.bf16.msra.mxu1 %v2186_v63 }
 0x177   :  { %909 = vmatprep.subr.bf16.mxu0 %v2075_v26  ;;  %1700 = vmatprep.subr.bf16.mxu1 %v2581_v59 }
 0x219   :  { %v725_v61 = vpop.f32.mrf.mxu0  ;;  %v766_v1 = vpop.f32.mrf.mxu1 }
 0x21a   :  { %v772_v4 = vadd.f32 %v725_v61, %v2226_v12  ;;  %v786_v10 = vadd.f32 %v2280_v5, %v766_v1 }
 0x21b   :  { %v727_v6 = vpop.f32.mrf.mxu0  ;;  %v1678_v13 = vpop.f32.mrf.mxu1 }
 0x21c   :  { %v1511_v16 = vmul.f32 -1.442695, %v772_v4  ;;  %v779_v35 = vadd.f32 %v727_v6, %v2228_v14 }
 0x21d   :  { %v729_v22 = vpop.f32.mrf.mxu0  ;;  %v769_v27 = vpop.f32.mrf.mxu1 }
 0x21e   :  { %1881 = vpow2.f32 %v1511_v16  ;;  %v1512_v7 = vmul.f32 -1.442695, %v779_v35 }
 0x21f   :  { %v730_v0 = vpop.f32.mrf.mxu0  ;;  %v1679_v8 = vpop.f32.mrf.mxu1 }
 0x220   :  { %1883 = vpow2.f32 %v1512_v7 }
 0x22b   :  { %v1882_v41 = vpop.eup %1881 }
 0x22c   :  { %v776_v11 = vadd.f32 1.0, %v1882_v41 }
 0x22d   :  { %v1884_v51 = vpop.eup %1883 }
 0x22e   :  { %1885 = vrcp.f32 %v776_v11  ;;  %v783_v33 = vadd.f32 1.0, %v1884_v51 }
 0x23b   :  { %v1886_v18 = vpop.eup %1885 }
 0x23c   :  { %v787_v12 = vmul.f32 %v1886_v18, %v786_v10 }
 0x23e   :  { %v788_v25 = vadd.f32 %v787_v12, %v2249_v39 }
 0x240   :  { %1887 = vtanh.f32 %v788_v25 }
 0x241   :  { %1889 = vrcp.f32 %v783_v33 }
 0x24d   :  { %v1888_v15 = vpop.eup %1887 }
 0x24e   :  { %v790_v61 = vsub.f32 %v2285_v43, %v1888_v15  ;;  %v1890_v4 = vpop.eup %1889 }
 0x250   :  { %v791_v14 = vmul.f32 %v1890_v4, %v790_v61 }
 0x252   :  { %v2333_v6 = vadd.f32 %v1888_v15, %v791_v14 }
 0x254   :  { %1513 = vst [vmem:[%s2570_s6 + $0x8] sm:$0xff] %v2333_v6  ;;  %v799_v1 = vpack.c.bf16 %v2333_v6, %v2333_v6 }
 0x256   :  { %833 = vmatmul.mubr.bf16.vlgmr.msra.gmra.mxu0 %v799_v1  ;;  %1697 = vmatmul.mubr.bf16.vlgmr.msra.gmra.mxu1 %v799_v1 }
 0x257   :  { %910 = vmatpush1.bf16.msra.mxu0 %v2077_v28  ;;  %1701 = vmatpush3.bf16.msra.mxu1 %v2107_v40 }
 0x258   :  { %911 = vmatprep.subr.bf16.mxu0 %v2080_v29  ;;  %1702 = vmatprep.subr.bf16.mxu1 %v2581_v59 }
 0x259   :  { %941 = vmatprep.mubr.bf16.mxu0 %v2582_v23  ;;  %1716 = vmatprep.mubr.msk.bf16.mxu1 %vm2021_vm0, %v2581_v59 }
 0x25b   :  { %912 = vmatpush1.bf16.msra.mxu0 %v2082_v30  ;;  %1703 = vmatpush3.bf16.msra.mxu1 %v2118_v45 }
 0x25c   :  { %913 = vmatprep.subr.bf16.mxu0 %v2093_v34  ;;  %1704 = vmatprep.subr.bf16.mxu1 %v2581_v59 }
 0x25f   :  { %914 = vmatpush1.bf16.msra.mxu0 %v2096_v36  ;;  %1705 = vmatpush3.bf16.msra.mxu1 %v2134_v50 }
 0x260   :  { %915 = vmatprep.subr.bf16.mxu0 %v2099_v37  ;;  %1706 = vmatprep.subr.bf16.mxu1 %v2581_v59 }
 0x263   :  { %916 = vmatpush1.bf16.msra.mxu0 %v2111_v42  ;;  %1707 = vmatpush3.bf16.msra.mxu1 %v2145_v54 }
 0x264   :  { %917 = vmatprep.subr.bf16.mxu0 %v2115_v44  ;;  %1708 = vmatprep.subr.bf16.mxu1 %v2581_v59 }
 0x267   :  { %918 = vmatpush1.bf16.msra.mxu0 %v2122_v46  ;;  %1709 = vmatpush3.bf16.msra.mxu1 %v2157_v57 }
 0x268   :  { %919 = vmatprep.subr.bf16.mxu0 %v2131_v49  ;;  %1710 = vmatprep.subr.bf16.mxu1 %v2581_v59 }
 0x26b   :  { %920 = vmatpush1.bf16.msra.mxu0 %v2138_v52  ;;  %1711 = vmatpush3.bf16.msra.mxu1 %v2171_v60 }
 0x26c   :  { %921 = vmatprep.subr.bf16.mxu0 %v2142_v53  ;;  %1712 = vmatprep.subr.bf16.mxu1 %v2581_v59 }
 0x26f   :  { %922 = vmatpush1.bf16.msra.mxu0 %v2151_v55  ;;  %1713 = vmatpush3.bf16.msra.mxu1 %v2179_v62 }
 0x270   :  { %923 = vmatprep.subr.bf16.mxu0 %v2154_v56  ;;  %1714 = vmatprep.subr.bf16.mxu1 %v2581_v59 }
 0x273   :  { %924 = vmatpush1.bf16.msra.mxu0 %v2161_v58  ;;  %1715 = vmatpush3.bf16.msra.mxu1 %v2186_v63 }
 0x274   :  { %1018 = vmatprep.subr.bf16.mxu0 %v2075_v26  ;;  %1720 = vmatprep.subr.bf16.mxu1 %v2581_v59 }
 0x316   :  { %v834_v39 = vpop.f32.mrf.mxu0  ;;  %v875_v43 = vpop.f32.mrf.mxu1 }
 0x317   :  { %v881_v13 = vadd.f32 %v834_v39, %v2232_v17  ;;  %v895_v12 = vadd.f32 %v2280_v5, %v875_v43 }
 0x318   :  { %v836_v16 = vpop.f32.mrf.mxu0  ;;  %v1698_v22 = vpop.f32.mrf.mxu1 }
 0x319   :  { %v1514_v27 = vmul.f32 -1.442695, %v881_v13  ;;  %v888_v41 = vadd.f32 %v836_v16, %v2234_v20 }
 0x31a   :  { %v838_v0 = vpop.f32.mrf.mxu0  ;;  %v878_v8 = vpop.f32.mrf.mxu1 }
 0x31b   :  { %1891 = vpow2.f32 %v1514_v27  ;;  %v1515_v11 = vmul.f32 -1.442695, %v888_v41 }
 0x31c   :  { %v839_v35 = vpop.f32.mrf.mxu0  ;;  %v1699_v7 = vpop.f32.mrf.mxu1 }
 0x31d   :  { %1893 = vpow2.f32 %v1515_v11 }
 0x328   :  { %v1892_v51 = vpop.eup %1891 }
 0x329   :  { %v885_v10 = vadd.f32 1.0, %v1892_v51 }
 0x32a   :  { %v1894_v18 = vpop.eup %1893 }
 0x32b   :  { %1895 = vrcp.f32 %v885_v10  ;;  %v892_v15 = vadd.f32 1.0, %v1894_v18 }
 0x338   :  { %v1896_v25 = vpop.eup %1895 }
 0x339   :  { %v896_v17 = vmul.f32 %v1896_v25, %v895_v12 }
 0x33b   :  { %v897_v33 = vadd.f32 %v896_v17, %v2237_v21 }
 0x33d   :  { %1897 = vtanh.f32 %v897_v33 }
 0x33e   :  { %1899 = vrcp.f32 %v892_v15 }
 0x34a   :  { %v1898_v61 = vpop.eup %1897 }
 0x34b   :  { %v899_v4 = vsub.f32 %v2333_v6, %v1898_v61  ;;  %v1900_v14 = vpop.eup %1899 }
 0x34d   :  { %v900_v20 = vmul.f32 %v1900_v14, %v899_v4 }
 0x34f   :  { %v2381_v1 = vadd.f32 %v1898_v61, %v900_v20 }
 0x351   :  { %1516 = vst [vmem:[%s2570_s6 + $0x10] sm:$0xff] %v2381_v1  ;;  %v908_v39 = vpack.c.bf16 %v2381_v1, %v2381_v1 }
 0x353   :  { %942 = vmatmul.mubr.bf16.vlgmr.msra.gmra.mxu0 %v908_v39  ;;  %1717 = vmatmul.mubr.bf16.vlgmr.msra.gmra.mxu1 %v908_v39 }
 0x354   :  { %1019 = vmatpush1.bf16.msra.mxu0 %v2077_v28  ;;  %1721 = vmatpush3.bf16.msra.mxu1 %v2107_v40 }
 0x355   :  { %1020 = vmatprep.subr.bf16.mxu0 %v2080_v29  ;;  %1722 = vmatprep.subr.bf16.mxu1 %v2581_v59 }
 0x356   :  { %1050 = vmatprep.mubr.bf16.mxu0 %v2582_v23  ;;  %1736 = vmatprep.mubr.msk.bf16.mxu1 %vm2021_vm0, %v2581_v59 }
 0x358   :  { %1021 = vmatpush1.bf16.msra.mxu0 %v2082_v30  ;;  %1723 = vmatpush3.bf16.msra.mxu1 %v2118_v45 }
 0x359   :  { %1022 = vmatprep.subr.bf16.mxu0 %v2093_v34  ;;  %1724 = vmatprep.subr.bf16.mxu1 %v2581_v59 }
 0x35c   :  { %1023 = vmatpush1.bf16.msra.mxu0 %v2096_v36  ;;  %1725 = vmatpush3.bf16.msra.mxu1 %v2134_v50 }
 0x35d   :  { %1024 = vmatprep.subr.bf16.mxu0 %v2099_v37  ;;  %1726 = vmatprep.subr.bf16.mxu1 %v2581_v59 }
 0x360   :  { %1025 = vmatpush1.bf16.msra.mxu0 %v2111_v42  ;;  %1727 = vmatpush3.bf16.msra.mxu1 %v2145_v54 }
 0x361   :  { %1026 = vmatprep.subr.bf16.mxu0 %v2115_v44  ;;  %1728 = vmatprep.subr.bf16.mxu1 %v2581_v59 }
 0x364   :  { %1027 = vmatpush1.bf16.msra.mxu0 %v2122_v46  ;;  %1729 = vmatpush3.bf16.msra.mxu1 %v2157_v57 }
 0x365   :  { %1028 = vmatprep.subr.bf16.mxu0 %v2131_v49  ;;  %1730 = vmatprep.subr.bf16.mxu1 %v2581_v59 }
 0x368   :  { %1029 = vmatpush1.bf16.msra.mxu0 %v2138_v52  ;;  %1731 = vmatpush3.bf16.msra.mxu1 %v2171_v60 }
 0x369   :  { %1030 = vmatprep.subr.bf16.mxu0 %v2142_v53  ;;  %1732 = vmatprep.subr.bf16.mxu1 %v2581_v59 }
 0x36c   :  { %1031 = vmatpush1.bf16.msra.mxu0 %v2151_v55  ;;  %1733 = vmatpush3.bf16.msra.mxu1 %v2179_v62 }
 0x36d   :  { %1032 = vmatprep.subr.bf16.mxu0 %v2154_v56  ;;  %1734 = vmatprep.subr.bf16.mxu1 %v2581_v59 }
 0x370   :  { %1033 = vmatpush1.bf16.msra.mxu0 %v2161_v58  ;;  %1735 = vmatpush3.bf16.msra.mxu1 %v2186_v63 }
 0x371   :  { %1127 = vmatprep.subr.bf16.mxu0 %v2075_v26  ;;  %1740 = vmatprep.subr.bf16.mxu1 %v2581_v59 }
 0x413   :  { %v943_v21 = vpop.f32.mrf.mxu0  ;;  %v984_v6 = vpop.f32.mrf.mxu1 }
 0x414   :  { %v990_v43 = vadd.f32 %v943_v21, %v2239_v24  ;;  %v1004_v18 = vadd.f32 %v2280_v5, %v984_v6 }
 0x415   :  { %v945_v13 = vpop.f32.mrf.mxu0  ;;  %v1718_v16 = vpop.f32.mrf.mxu1 }
 0x416   :  { %v1517_v22 = vmul.f32 -1.442695, %v990_v43  ;;  %v997_v7 = vadd.f32 %v945_v13, %v2241_v31 }
 0x417   :  { %v947_v27 = vpop.f32.mrf.mxu0  ;;  %v987_v0 = vpop.f32.mrf.mxu1 }
 0x418   :  { %1901 = vpow2.f32 %v1517_v22  ;;  %v1518_v41 = vmul.f32 -1.442695, %v997_v7 }
 0x419   :  { %v948_v8 = vpop.f32.mrf.mxu0  ;;  %v1719_v35 = vpop.f32.mrf.mxu1 }
 0x41a   :  { %1903 = vpow2.f32 %v1518_v41 }
 0x425   :  { %v1902_v11 = vpop.eup %1901 }
 0x426   :  { %v994_v51 = vadd.f32 1.0, %v1902_v11 }
 0x427   :  { %v1904_v10 = vpop.eup %1903 }
 0x428   :  { %1905 = vrcp.f32 %v994_v51  ;;  %v1001_v17 = vadd.f32 1.0, %v1904_v10 }
 0x435   :  { %v1906_v12 = vpop.eup %1905 }
 0x436   :  { %v1005_v24 = vmul.f32 %v1906_v12, %v1004_v18 }
 0x438   :  { %v1006_v25 = vadd.f32 %v1005_v24, %v2244_v32 }
 0x43a   :  { %1907 = vtanh.f32 %v1006_v25 }
 0x43b   :  { %1909 = vrcp.f32 %v1001_v17 }
 0x447   :  { %v1908_v33 = vpop.eup %1907 }
 0x448   :  { %v1008_v15 = vsub.f32 %v2381_v1, %v1908_v33  ;;  %v1910_v61 = vpop.eup %1909 }
 0x44a   :  { %v1009_v31 = vmul.f32 %v1910_v61, %v1008_v15 }
 0x44c   :  { %v2429_v4 = vadd.f32 %v1908_v33, %v1009_v31 }
 0x44e   :  { %1519 = vst [vmem:[%s2570_s6 + $0x18] sm:$0xff] %v2429_v4  ;;  %v1017_v14 = vpack.c.bf16 %v2429_v4, %v2429_v4 }
 0x450   :  { %1051 = vmatmul.mubr.bf16.vlgmr.msra.gmra.mxu0 %v1017_v14  ;;  %1737 = vmatmul.mubr.bf16.vlgmr.msra.gmra.mxu1 %v1017_v14  ;;  %v1954_v14 = vld [vmem:[#allocation5 + $0x94] ss:$12 sps:$4 sm:$0xff]  }
 0x451   :  { %1128 = vmatpush1.bf16.msra.mxu0 %v2077_v28  ;;  %1741 = vmatpush3.bf16.msra.mxu1 %v2107_v40 }
 0x452   :  { %1129 = vmatprep.subr.bf16.mxu0 %v2080_v29  ;;  %1742 = vmatprep.subr.bf16.mxu1 %v2581_v59 }
 0x453   :  { %1159 = vmatprep.mubr.bf16.mxu0 %v2582_v23  ;;  %1756 = vmatprep.mubr.msk.bf16.mxu1 %vm2021_vm0, %v2581_v59 }
 0x455   :  { %1130 = vmatpush1.bf16.msra.mxu0 %v2082_v30  ;;  %1743 = vmatpush3.bf16.msra.mxu1 %v2118_v45 }
 0x456   :  { %1131 = vmatprep.subr.bf16.mxu0 %v2093_v34  ;;  %1744 = vmatprep.subr.bf16.mxu1 %v2581_v59 }
 0x459   :  { %1132 = vmatpush1.bf16.msra.mxu0 %v2096_v36  ;;  %1745 = vmatpush3.bf16.msra.mxu1 %v2134_v50 }
 0x45a   :  { %1133 = vmatprep.subr.bf16.mxu0 %v2099_v37  ;;  %1746 = vmatprep.subr.bf16.mxu1 %v2581_v59 }
 0x45d   :  { %1134 = vmatpush1.bf16.msra.mxu0 %v2111_v42  ;;  %1747 = vmatpush3.bf16.msra.mxu1 %v2145_v54 }
 0x45e   :  { %1135 = vmatprep.subr.bf16.mxu0 %v2115_v44  ;;  %1748 = vmatprep.subr.bf16.mxu1 %v2581_v59 }
 0x461   :  { %1136 = vmatpush1.bf16.msra.mxu0 %v2122_v46  ;;  %1749 = vmatpush3.bf16.msra.mxu1 %v2157_v57 }
 0x462   :  { %1137 = vmatprep.subr.bf16.mxu0 %v2131_v49  ;;  %1750 = vmatprep.subr.bf16.mxu1 %v2581_v59 }
 0x465   :  { %1138 = vmatpush1.bf16.msra.mxu0 %v2138_v52  ;;  %1751 = vmatpush3.bf16.msra.mxu1 %v2171_v60 }
 0x466   :  { %1139 = vmatprep.subr.bf16.mxu0 %v2142_v53  ;;  %1752 = vmatprep.subr.bf16.mxu1 %v2581_v59 }
 0x469   :  { %1140 = vmatpush1.bf16.msra.mxu0 %v2151_v55  ;;  %1753 = vmatpush3.bf16.msra.mxu1 %v2179_v62 }
 0x46a   :  { %1141 = vmatprep.subr.bf16.mxu0 %v2154_v56  ;;  %1754 = vmatprep.subr.bf16.mxu1 %v2581_v59 }
 0x46d   :  { %1142 = vmatpush1.bf16.msra.mxu0 %v2161_v58  ;;  %1755 = vmatpush3.bf16.msra.mxu1 %v2186_v63 }
 0x46e   :  { %1236 = vmatprep.subr.bf16.mxu0 %v2075_v26  ;;  %1760 = vmatprep.subr.bf16.mxu1 %v2581_v59 }
 0x510   :  { %v1052_v32 = vpop.f32.mrf.mxu0  ;;  %v1093_v20 = vpop.f32.mrf.mxu1 }
 0x511   :  { %v1099_v1 = vadd.f32 %v1052_v32, %v2246_v38  ;;  %v1113_v7 = vadd.f32 %v2280_v5, %v1093_v20  ;;  %v1955_v32 = vld [vmem:[#allocation5 + $0x90] ss:$12 sps:$4 sm:$0xff]   ;;  %v1956_v20 = vld [vmem:[#allocation5 + $0x98] ss:$12 sps:$4 sm:$0xff]  }
 0x512   :  { %v1054_v39 = vpop.f32.mrf.mxu0  ;;  %v1738_v21 = vpop.f32.mrf.mxu1 }
 0x513   :  { %v1520_v6 = vmul.f32 -1.442695, %v1099_v1  ;;  %v1106_v27 = vadd.f32 %v1054_v39, %v2251_v48  ;;  %v1957_v1 = vld [vmem:[#allocation5 + $0x7c] ss:$12 sps:$4 sm:$0xff]   ;;  %v1958_v39 = vld [vmem:[#allocation5 + $0x78] ss:$12 sps:$4 sm:$0xff]  }
 0x514   :  { %v1056_v43 = vpop.f32.mrf.mxu0  ;;  %v1096_v13 = vpop.f32.mrf.mxu1  ;;  %v1959_v21 = vld [vmem:[#allocation5 + $0x80] ss:$12 sps:$4 sm:$0xff]  }
 0x515   :  { %1911 = vpow2.f32 %v1520_v6  ;;  %v1521_v0 = vmul.f32 -1.442695, %v1106_v27  ;;  %v1960_v6 = vld [vmem:[#allocation5 + $0x64] ss:$12 sps:$4 sm:$0xff]   ;;  %v1962_v43 = vld [vmem:[#allocation5 + $0x68] ss:$12 sps:$4 sm:$0xff]  }
 0x516   :  { %v1057_v16 = vpop.f32.mrf.mxu0  ;;  %v1739_v22 = vpop.f32.mrf.mxu1  ;;  %v1963_v13 = vld [vmem:[#allocation5 + $0x4c] ss:$12 sps:$4 sm:$0xff]   ;;  %v1966_v27 = vld [vmem:[#allocation5 + $0x30] ss:$12 sps:$4 sm:$0xff]  }
 0x517   :  { %1913 = vpow2.f32 %v1521_v0  ;;  %v1964_v16 = vld [vmem:[#allocation5 + $0x48] ss:$12 sps:$4 sm:$0xff]  }
 0x518   :  { %v1965_v22 = vld [vmem:[#allocation5 + $0x34] ss:$12 sps:$4 sm:$0xff]   ;;  %v1967_v0 = vld [vmem:[#allocation5 + $0x1c] ss:$12 sps:$4 sm:$0xff]  }
 0x522   :  { %v1912_v8 = vpop.eup %1911 }
 0x523   :  { %v1103_v35 = vadd.f32 1.0, %v1912_v8  ;;  %v1968_v8 = vld [vmem:[#allocation5 + $0x18] ss:$12 sps:$4 sm:$0xff]  }
 0x524   :  { %v1914_v26 = vpop.eup %1913 }
 0x525   :  { %1915 = vrcp.f32 %v1103_v35  ;;  %v1110_v51 = vadd.f32 1.0, %v1914_v26  ;;  %v1969_v35 = vld [vmem:[#allocation5 + $0x4] ss:$12 sps:$4 sm:$0xff]  }
 0x532   :  { %v1916_v41 = vpop.eup %1915 }
 0x533   :  { %v1114_v38 = vmul.f32 %v1916_v41, %v1113_v7  ;;  %v2583_v41 = vld [vmem:[#allocation11_spill] sm:$0xff] }
 0x535   :  { %v1115_v11 = vadd.f32 %v1114_v38, %v2259_v3 }
 0x537   :  { %1917 = vtanh.f32 %v1115_v11 }
 0x538   :  { %1919 = vrcp.f32 %v1110_v51 }
 0x544   :  { %v1918_v10 = vpop.eup %1917 }
 0x545   :  { %v1117_v18 = vsub.f32 %v2429_v4, %v1918_v10  ;;  %v1920_v12 = vpop.eup %1919  ;;  %v1953_v4 = vld [vmem:[#allocation5 + $0xb0] ss:$12 sps:$4 sm:$0xff]  }
 0x547   :  { %v1118_v48 = vmul.f32 %v1920_v12, %v1117_v18 }
 0x549   :  { %v2477_v24 = vadd.f32 %v1918_v10, %v1118_v48  ;;  %v2584_v48 = vld [vmem:[#allocation12_spill] sm:$0xff] }
 0x54b   :  { %1522 = vst [vmem:[%s2570_s6 + $0x20] sm:$0xff] %v2477_v24  ;;  %v1126_v25 = vpack.c.bf16 %v2477_v24, %v2477_v24 }
 0x54d   :  { %1160 = vmatmul.mubr.bf16.vlgmr.msra.gmra.mxu0 %v1126_v25  ;;  %1757 = vmatmul.mubr.bf16.vlgmr.msra.gmra.mxu1 %v1126_v25 }
 0x54e   :  { %1237 = vmatpush1.bf16.msra.mxu0 %v2077_v28  ;;  %1761 = vmatpush3.bf16.msra.mxu1 %v2107_v40  ;;  %v1951_v28 = vld [vmem:[#allocation5 + $0xac] ss:$12 sps:$4 sm:$0xff]  }
 0x54f   :  { %1238 = vmatprep.subr.bf16.mxu0 %v2080_v29  ;;  %1762 = vmatprep.subr.bf16.mxu1 %v2581_v59 }
 0x550   :  { %1268 = vmatprep.mubr.bf16.mxu0 %v2582_v23  ;;  %1776 = vmatprep.mubr.msk.bf16.mxu1 %vm2021_vm0, %v2581_v59 }
 0x552   :  { %1239 = vmatpush1.bf16.msra.mxu0 %v2082_v30  ;;  %1763 = vmatpush3.bf16.msra.mxu1 %v2118_v45 }
 0x553   :  { %1240 = vmatprep.subr.bf16.mxu0 %v2093_v34  ;;  %1764 = vmatprep.subr.bf16.mxu1 %v2581_v59 }
 0x556   :  { %1241 = vmatpush1.bf16.msra.mxu0 %v2096_v36  ;;  %1765 = vmatpush3.bf16.msra.mxu1 %v2134_v50 }
 0x557   :  { %1242 = vmatprep.subr.bf16.mxu0 %v2099_v37  ;;  %1766 = vmatprep.subr.bf16.mxu1 %v2581_v59 }
 0x55a   :  { %1243 = vmatpush1.bf16.msra.mxu0 %v2111_v42  ;;  %1767 = vmatpush3.bf16.msra.mxu1 %v2145_v54 }
 0x55b   :  { %1244 = vmatprep.subr.bf16.mxu0 %v2115_v44  ;;  %1768 = vmatprep.subr.bf16.mxu1 %v2581_v59 }
 0x55e   :  { %1245 = vmatpush1.bf16.msra.mxu0 %v2122_v46  ;;  %1769 = vmatpush3.bf16.msra.mxu1 %v2157_v57 }
 0x55f   :  { %1246 = vmatprep.subr.bf16.mxu0 %v2131_v49  ;;  %1770 = vmatprep.subr.bf16.mxu1 %v2581_v59 }
 0x562   :  { %1247 = vmatpush1.bf16.msra.mxu0 %v2138_v52  ;;  %1771 = vmatpush3.bf16.msra.mxu1 %v2171_v60 }
 0x563   :  { %1248 = vmatprep.subr.bf16.mxu0 %v2142_v53  ;;  %1772 = vmatprep.subr.bf16.mxu1 %v2581_v59 }
 0x566   :  { %1249 = vmatpush1.bf16.msra.mxu0 %v2151_v55  ;;  %1773 = vmatpush3.bf16.msra.mxu1 %v2179_v62 }
 0x567   :  { %1250 = vmatprep.subr.bf16.mxu0 %v2154_v56  ;;  %1774 = vmatprep.subr.bf16.mxu1 %v2581_v59 }
 0x56a   :  { %1251 = vmatpush1.bf16.msra.mxu0 %v2161_v58  ;;  %1775 = vmatpush3.bf16.msra.mxu1 %v2186_v63 }
 0x56b   :  { %1345 = vmatprep.subr.bf16.mxu0 %v1951_v28  ;;  %1780 = vmatprep.subr.bf16.mxu1 %v2581_v59 }
 0x60d   :  { %v1161_v29 = vpop.f32.mrf.mxu0  ;;  %v1202_v30 = vpop.f32.mrf.mxu1 }
 0x60e   :  { %v1208_v34 = vadd.f32 %v1161_v29, %v2256_v2  ;;  %v1222_v55 = vadd.f32 %v2280_v5, %v1202_v30 }
 0x60f   :  { %v1163_v36 = vpop.f32.mrf.mxu0  ;;  %v1758_v37 = vpop.f32.mrf.mxu1 }
 0x610   :  { %v1523_v40 = vmul.f32 -1.442695, %v1208_v34  ;;  %v1215_v49 = vadd.f32 %v1163_v36, %v2261_v9  ;;  %v2585_v36 = vld [vmem:[#allocation9_spill] sm:$0xff] }
 0x611   :  { %v1165_v42 = vpop.f32.mrf.mxu0  ;;  %v1205_v44 = vpop.f32.mrf.mxu1 }
 0x612   :  { %1921 = vpow2.f32 %v1523_v40  ;;  %v1524_v50 = vmul.f32 -1.442695, %v1215_v49 }
 0x613   :  { %v1166_v45 = vpop.f32.mrf.mxu0  ;;  %v1759_v46 = vpop.f32.mrf.mxu1 }
 0x614   :  { %1923 = vpow2.f32 %v1524_v50 }
 0x61f   :  { %v1922_v52 = vpop.eup %1921 }
 0x620   :  { %v1212_v53 = vadd.f32 1.0, %v1922_v52 }
 0x621   :  { %v1924_v54 = vpop.eup %1923 }
 0x622   :  { %1925 = vrcp.f32 %v1212_v53  ;;  %v1219_v3 = vadd.f32 1.0, %v1924_v54  ;;  %v2586_v54 = vld [vmem:[#allocation13_spill] sm:$0xff] }
 0x62f   :  { %v1926_v56 = vpop.eup %1925 }
 0x630   :  { %v1223_v58 = vmul.f32 %v1926_v56, %v1222_v55 }
 0x632   :  { %v1224_v2 = vadd.f32 %v1223_v58, %v2269_v19  ;;  %v1952_v19 = vld [vmem:[#allocation5 + $0xa8] ss:$12 sps:$4 sm:$0xff]  }
 0x634   :  { %1927 = vtanh.f32 %v1224_v2 }
 0x635   :  { %1929 = vrcp.f32 %v1219_v3 }
 0x641   :  { %v1928_v17 = vpop.eup %1927 }
 0x642   :  { %v1226_v33 = vsub.f32 %v2477_v24, %v1928_v17  ;;  %v1930_v15 = vpop.eup %1929 }
 0x644   :  { %v1227_v9 = vmul.f32 %v1930_v15, %v1226_v33 }
 0x646   :  { %v2524_v61 = vadd.f32 %v1928_v17, %v1227_v9 }
 0x648   :  { %1525 = vst [vmem:[%s2570_s6 + $0x28] sm:$0xff] %v2524_v61  ;;  %v1235_v31 = vpack.c.bf16 %v2524_v61, %v2524_v61 }
 0x64a   :  { %1269 = vmatmul.mubr.bf16.vlgmr.msra.gmra.mxu0 %v1235_v31  ;;  %1777 = vmatmul.mubr.bf16.vlgmr.msra.gmra.mxu1 %v1235_v31 }
 0x64b   :  { %1346 = vmatpush1.bf16.msra.mxu0 %v1952_v19  ;;  %1781 = vmatpush3.bf16.msra.mxu1 %v1953_v4 }
 0x64c   :  { %1347 = vmatprep.subr.bf16.mxu0 %v1954_v14  ;;  %1782 = vmatprep.subr.bf16.mxu1 %v2581_v59 }
 0x64d   :  { %1377 = vmatprep.mubr.bf16.mxu0 %v2582_v23  ;;  %1796 = vmatprep.mubr.msk.bf16.mxu1 %vm2021_vm0, %v2581_v59  ;;  %v1961_v23 = vld [vmem:[#allocation5 + $0x60] ss:$12 sps:$4 sm:$0xff]  }
 0x64f   :  { %1348 = vmatpush1.bf16.msra.mxu0 %v1955_v32  ;;  %1783 = vmatpush3.bf16.msra.mxu1 %v1956_v20 }
 0x650   :  { %1349 = vmatprep.subr.bf16.mxu0 %v1957_v1  ;;  %1784 = vmatprep.subr.bf16.mxu1 %v2581_v59  ;;  %v2587_v1 = vld [vmem:[#allocation10_spill] sm:$0xff] }
 0x653   :  { %1350 = vmatpush1.bf16.msra.mxu0 %v1958_v39  ;;  %1785 = vmatpush3.bf16.msra.mxu1 %v1959_v21 }
 0x654   :  { %1351 = vmatprep.subr.bf16.mxu0 %v1960_v6  ;;  %1786 = vmatprep.subr.bf16.mxu1 %v2581_v59 }
 0x657   :  { %1352 = vmatpush1.bf16.msra.mxu0 %v1961_v23  ;;  %1787 = vmatpush3.bf16.msra.mxu1 %v1962_v43 }
 0x658   :  { %1353 = vmatprep.subr.bf16.mxu0 %v1963_v13  ;;  %1788 = vmatprep.subr.bf16.mxu1 %v2581_v59 }
 0x65b   :  { %1354 = vmatpush1.bf16.msra.mxu0 %v1964_v16  ;;  %1789 = vmatpush3.bf16.msra.mxu1 %v2157_v57  ;;  %v1970_v57 = vld [vmem:[#allocation5] ss:$12 sps:$4 sm:$0xff]  }
 0x65c   :  { %1355 = vmatprep.subr.bf16.mxu0 %v1965_v22  ;;  %1790 = vmatprep.subr.bf16.mxu1 %v2581_v59 }
 0x65f   :  { %1356 = vmatpush1.bf16.msra.mxu0 %v1966_v27  ;;  %1791 = vmatpush3.bf16.msra.mxu1 %v2171_v60 }
 0x660   :  { %1357 = vmatprep.subr.bf16.mxu0 %v1967_v0  ;;  %1792 = vmatprep.subr.bf16.mxu1 %v2581_v59 }
 0x663   :  { %1358 = vmatpush1.bf16.msra.mxu0 %v1968_v8  ;;  %1793 = vmatpush3.bf16.msra.mxu1 %v2179_v62 }
 0x664   :  { %1359 = vmatprep.subr.bf16.mxu0 %v1969_v35  ;;  %1794 = vmatprep.subr.bf16.mxu1 %v2581_v59 }
 0x667   :  { %1360 = vmatpush1.bf16.msra.mxu0 %v1970_v57  ;;  %1795 = vmatpush3.bf16.msra.mxu1 %v2186_v63 }
 0x70a   :  { %v1270_v26 = vpop.f32.mrf.mxu0  ;;  %v1311_v7 = vpop.f32.mrf.mxu1 }
 0x70b   :  { %v1317_v60 = vadd.f32 %v1270_v26, %v2583_v41  ;;  %v1331_v29 = vadd.f32 %v2280_v5, %v1311_v7 }
 0x70c   :  { %v1272_v38 = vpop.f32.mrf.mxu0  ;;  %v1778_v11 = vpop.f32.mrf.mxu1 }
 0x70d   :  { %v1526_v51 = vmul.f32 -1.442695, %v1317_v60  ;;  %v1324_v24 = vadd.f32 %v1272_v38, %v2584_v48 }
 0x70e   :  { %v1274_v10 = vpop.f32.mrf.mxu0  ;;  %v1314_v18 = vpop.f32.mrf.mxu1 }
 0x70f   :  { %1931 = vpow2.f32 %v1526_v51  ;;  %v1527_v25 = vmul.f32 -1.442695, %v1324_v24 }
 0x710   :  { %v1275_v12 = vpop.f32.mrf.mxu0  ;;  %v1779_v62 = vpop.f32.mrf.mxu1 }
 0x711   :  { %1933 = vpow2.f32 %v1527_v25 }
 0x71c   :  { %v1932_v59 = vpop.eup %1931 }
 0x71d   :  { %v1321_v28 = vadd.f32 1.0, %v1932_v59 }
 0x71e   :  { %v1934_v63 = vpop.eup %1933 }
 0x71f   :  { %1935 = vrcp.f32 %v1321_v28  ;;  %v1328_v40 = vadd.f32 1.0, %v1934_v63 }
 0x72c   :  { %v1936_v30 = vpop.eup %1935 }
 0x72d   :  { %v1332_v34 = vmul.f32 %v1936_v30, %v1331_v29 }
 0x72f   :  { %v1333_v37 = vadd.f32 %v1332_v34, %v2585_v36 }
 0x731   :  { %1937 = vtanh.f32 %v1333_v37 }
 0x732   :  { %1939 = vrcp.f32 %v1328_v40 }
 0x73e   :  { %v1938_v42 = vpop.eup %1937 }
 0x73f   :  { %v1335_v44 = vsub.f32 %v2524_v61, %v1938_v42  ;;  %v1940_v45 = vpop.eup %1939 }
 0x741   :  { %v1336_v46 = vmul.f32 %v1940_v45, %v1335_v44 }
 0x743   :  { %v1337_v49 = vadd.f32 %v1938_v42, %v1336_v46 }
 0x745   :  { %1528 = vst [vmem:[%s2570_s6 + $0x30] sm:$0xff] %v1337_v49  ;;  %v1344_v50 = vpack.c.bf16 %v1337_v49, %v1337_v49 }
 0x747   :  { %1378 = vmatmul.mubr.bf16.vlgmr.msra.gmra.mxu0 %v1344_v50  ;;  %1797 = vmatmul.mubr.bf16.vlgmr.msra.gmra.mxu1 %v1344_v50 }
 0x807   :  { %v1379_v52 = vpop.f32.mrf.mxu0  ;;  %v1420_v53 = vpop.f32.mrf.mxu1 }
 0x808   :  { %v1426_v55 = vadd.f32 %v1379_v52, %v2586_v54  ;;  %v1440_v14 = vadd.f32 %v2280_v5, %v1420_v53 }
 0x809   :  { %v1381_v56 = vpop.f32.mrf.mxu0  ;;  %v1798_v58 = vpop.f32.mrf.mxu1 }
 0x80a   :  { %v1529_v2 = vmul.f32 -1.442695, %v1426_v55  ;;  %v1433_v9 = vadd.f32 %v1381_v56, %v2275_v47 }
 0x80b   :  { %v1383_v3 = vpop.f32.mrf.mxu0  ;;  %v1423_v17 = vpop.f32.mrf.mxu1 }
 0x80c   :  { %1941 = vpow2.f32 %v1529_v2  ;;  %v1530_v61 = vmul.f32 -1.442695, %v1433_v9 }
 0x80d   :  { %v1384_v33 = vpop.f32.mrf.mxu0  ;;  %v1799_v15 = vpop.f32.mrf.mxu1 }
 0x80e   :  { %1943 = vpow2.f32 %v1530_v61 }
 0x819   :  { %v1942_v31 = vpop.eup %1941 }
 0x81a   :  { %v1430_v19 = vadd.f32 1.0, %v1942_v31 }
 0x81b   :  { %v1944_v4 = vpop.eup %1943 }
 0x81c   :  { %1945 = vrcp.f32 %v1430_v19  ;;  %v1437_v21 = vadd.f32 1.0, %v1944_v4 }
 0x829   :  { %v1946_v32 = vpop.eup %1945 }
 0x82a   :  { %v1441_v20 = vmul.f32 %v1946_v32, %v1440_v14 }
 0x82c   :  { %v1442_v39 = vadd.f32 %v1441_v20, %v2587_v1 }
 0x82e   :  { %1947 = vtanh.f32 %v1442_v39 }
 0x82f   :  { %1949 = vrcp.f32 %v1437_v21 }
 0x83b   :  { %v1948_v6 = vpop.eup %1947 }
 0x83c   :  { %v1444_v23 = vsub.f32 %v1337_v49, %v1948_v6  ;;  %v1950_v43 = vpop.eup %1949 }
 0x83e   :  { %v1445_v13 = vmul.f32 %v1950_v43, %v1444_v23 }
 0x840   :  { %v1446_v47 = vadd.f32 %v1948_v6, %v1445_v13 }
 0x842   :  { %1531 = vst [vmem:[%s2570_s6 + $0x38] sm:$0xff] %v1446_v47  ;;  %1449 = vst [vmem:[%s2571_s7] sm:$0xff] %v1446_v47 }
 0x843   :  { %1458 = vsyncpa [#allocation4], 1 }
 0x844   :  { %1459 = vsyncpa [#allocation6], 1 }

</bundles_post_ra>
